<compile_context>
chip_gen: v7x
topology: tpu7x:2x2x1
jax: 0.10.0
libtpu: 0.0.40
codegen_flags: <defaults>
</compile_context>

<pallas_src>
import math
import functools

import jax
import jax.numpy as jnp
from jax.experimental import pallas as pl
from jax.experimental.pallas import tpu as pltpu


# ------------------------------ fused whole-model kernel ------------------------------

def fused_transformer_kernel(
    # layer-invariant inputs (resident across the grid)
    src_ref, pe_ref, we_ref, be_ref,
    # per-layer weight slabs (streamed per grid step; matmul weights are bf16)
    wqkv_ref, bqkv_ref, wo_ref, bo_ref,
    g1_ref, beta1_ref, w1_ref, b1_ref, w2_ref, b2_ref, g2_ref, beta2_ref,
    # output head (resident)
    wout_ref, bout_ref,
    # output + scratch
    out_ref, x_ref, mask_ref,
    *, S, N, H, nhead, scale_embed, scale_attn, eps):
    l = pl.program_id(0)
    n_layers = pl.num_programs(0)
    Dh = H // nhead
    T = N * S

    # ---- first grid step: embedding + positional encoding + causal mask ----
    @pl.when(l == 0)
    def _():
        h = jnp.dot(src_ref[...].astype(jnp.bfloat16), we_ref[...],
                    preferred_element_type=jnp.float32) + be_ref[...]
        h = jnp.where(h >= 0.0, h, 0.01 * h)                  # leaky_relu(0.01)
        x_ref[...] = h * scale_embed + pe_ref[...]            # pe pre-tiled to (T, H)
        row = jax.lax.broadcasted_iota(jnp.int32, (S, S), 0)
        col = jax.lax.broadcasted_iota(jnp.int32, (S, S), 1)
        mask_ref[...] = jnp.where(row >= col, 0.0, -1e30).astype(jnp.float32)

    x = x_ref[...]                                            # (T, H) f32
    mask = mask_ref[...]                                      # (S, S) f32, built once

    # ---- self attention (post-norm nn.TransformerEncoderLayer) ----
    qkv = jnp.dot(x.astype(jnp.bfloat16), wqkv_ref[0],
                  preferred_element_type=jnp.float32) + bqkv_ref[0]   # (T, 3H) f32

    heads = []
    for hh in range(nhead):                                   # static unroll over heads only
        c = hh * Dh
        q = qkv[:, c:c + Dh].reshape(N, S, Dh).astype(jnp.bfloat16)
        k = qkv[:, H + c:H + c + Dh].reshape(N, S, Dh).astype(jnp.bfloat16)
        v = qkv[:, 2 * H + c:2 * H + c + Dh].reshape(N, S, Dh).astype(jnp.bfloat16)
        # batched over N in a single MXU contraction (no per-batch unroll)
        s = jnp.einsum('nqd,nkd->nqk', q, k, preferred_element_type=jnp.float32)
        s = s * scale_attn + mask[None, :, :]
        m = jnp.max(s, axis=-1, keepdims=True)
        p = jnp.exp(s - m)
        p = p * pl.reciprocal(jnp.sum(p, axis=-1, keepdims=True), approx=True)
        o = jnp.einsum('nqk,nkd->nqd', p.astype(jnp.bfloat16), v,
                       preferred_element_type=jnp.float32)
        heads.append(o.reshape(T, Dh))
    attn = jnp.concatenate(heads, axis=-1)                    # (T, H) f32

    def layernorm(v, g, b):
        mu = jnp.mean(v, axis=-1, keepdims=True)
        vc = v - mu
        var = jnp.mean(vc * vc, axis=-1, keepdims=True)
        return vc * jax.lax.rsqrt(var + eps) * g + b

    # out-proj + residual, LN1
    y = jnp.dot(attn.astype(jnp.bfloat16), wo_ref[0],
                preferred_element_type=jnp.float32) + bo_ref[0] + x
    y = layernorm(y, g1_ref[0], beta1_ref[0])

    # FFN (relu) + residual, LN2
    hmid = jnp.dot(y.astype(jnp.bfloat16), w1_ref[0],
                   preferred_element_type=jnp.float32) + b1_ref[0]
    hmid = jnp.maximum(hmid, 0.0)
    z = jnp.dot(hmid.astype(jnp.bfloat16), w2_ref[0],
                preferred_element_type=jnp.float32) + b2_ref[0] + y
    z = layernorm(z, g2_ref[0], beta2_ref[0])

    x_ref[...] = z                                            # carry activation to next layer

    # ---- last grid step: output projection (Linear + Tanh) ----
    @pl.when(l == n_layers - 1)
    def _():
        out_ref[...] = jnp.tanh(
            jnp.dot(z.astype(jnp.bfloat16), wout_ref[...],
                    preferred_element_type=jnp.float32) + bout_ref[...])


# ---------------------------------- params / wrapper ----------------------------------

def init_params(key, input_size, output_size, hidden_size, n_layers, dim_feedforward):
    """Deterministic parameter init; weights stored as (fan_in, fan_out); layers stacked [L,...]."""
    def lin(k, fan_in, fan_out):
        k1, k2 = jax.random.split(k)
        bound = 1.0 / math.sqrt(fan_in)
        w = jax.random.uniform(k1, (fan_in, fan_out), jnp.float32, -bound, bound)
        b = jax.random.uniform(k2, (1, fan_out), jnp.float32, -bound, bound)
        return w, b

    H, F = hidden_size, dim_feedforward
    keys = jax.random.split(key, 2 + n_layers)
    we, be = lin(keys[0], input_size, H)
    wout, bout = lin(keys[1], H, output_size)

    per_layer = []
    for l in range(n_layers):
        lk = jax.random.split(keys[2 + l], 4)
        per_layer.append(dict(
            in_proj=lin(lk[0], H, 3 * H),
            out_proj=lin(lk[1], H, H),
            ffn1=lin(lk[2], H, F),
            ffn2=lin(lk[3], F, H),
        ))

    def stack(get):
        return jnp.stack([get(p) for p in per_layer], axis=0)

    return dict(
        embed=(we, be),
        out=(wout, bout),
        wqkv=stack(lambda p: p['in_proj'][0]),   # [L, H, 3H]
        bqkv=stack(lambda p: p['in_proj'][1]),   # [L, 1, 3H]
        wo=stack(lambda p: p['out_proj'][0]),    # [L, H, H]
        bo=stack(lambda p: p['out_proj'][1]),    # [L, 1, H]
        w1=stack(lambda p: p['ffn1'][0]),        # [L, H, F]
        b1=stack(lambda p: p['ffn1'][1]),        # [L, 1, F]
        w2=stack(lambda p: p['ffn2'][0]),        # [L, F, H]
        b2=stack(lambda p: p['ffn2'][1]),        # [L, 1, H]
        g1=jnp.ones((n_layers, 1, H), jnp.float32),
        beta1=jnp.zeros((n_layers, 1, H), jnp.float32),
        g2=jnp.ones((n_layers, 1, H), jnp.float32),
        beta2=jnp.zeros((n_layers, 1, H), jnp.float32),
    )


def transformer_forward(src, params, *, hidden_size, nhead):
    S, N, I = src.shape
    H = hidden_size
    Dh = H // nhead
    T = N * S
    L = params['wqkv'].shape[0]
    F = params['w1'].shape[-1]

    we, be = params['embed']
    wout, bout = params['out']
    O = wout.shape[1]
    Op = 128 * pl.cdiv(O, 128)                               # lane-dense output width
    wout_p = jnp.zeros((H, Op), jnp.float32).at[:, :O].set(wout).astype(jnp.bfloat16)
    bout_p = jnp.zeros((1, Op), jnp.float32).at[:, :O].set(bout)

    # PositionalEncoding table pe[:S], pre-tiled to (T, H) batch-major on the host.
    pos = jnp.arange(S, dtype=jnp.float32)[:, None]
    div = jnp.exp(jnp.arange(0, H, 2, dtype=jnp.float32) * (-math.log(10000.0) / H))
    pe = jnp.zeros((S, H), jnp.float32)
    pe = pe.at[:, 0::2].set(jnp.sin(pos * div))
    pe = pe.at[:, 1::2].set(jnp.cos(pos * div))
    pe_full = jnp.tile(pe, (N, 1))                           # (T, H)

    # batch-major flattening: (S, N, I) -> (N*S, I) so per-batch row slices are contiguous.
    src_flat = src.transpose(1, 0, 2).reshape(T, I)

    # bf16 matmul weights (halves HBM->VMEM DMA and VMEM double-buffer footprint,
    # enables full-rate MXU); biases / LN params stay f32 (applied post-accumulation).
    bf16 = jnp.bfloat16
    we_b = we.astype(bf16)
    wqkv_b = params['wqkv'].astype(bf16)
    wo_b = params['wo'].astype(bf16)
    w1_b = params['w1'].astype(bf16)
    w2_b = params['w2'].astype(bf16)

    kernel = functools.partial(
        fused_transformer_kernel,
        S=S, N=N, H=H, nhead=nhead,
        scale_embed=math.sqrt(H), scale_attn=1.0 / math.sqrt(Dh), eps=1e-5)

    def const2d(a, b):    # layer-invariant 2-D input, resident across the grid
        return pl.BlockSpec((a, b), lambda l: (0, 0))

    def per_layer(a, b):  # stacked [L, a, b] slab, streamed (double-buffered) per grid step
        return pl.BlockSpec((1, a, b), lambda l: (l, 0, 0))

    # Explicit VMEM budget: residents + output block + scratches + 2x per-layer slab.
    def nbytes(a):
        return a.size * a.dtype.itemsize
    resident = sum(nbytes(a) for a in (src_flat, pe_full, we_b, be, wout_p, bout_p))
    resident += T * Op * 4            # output block
    resident += T * H * 4 + S * S * 4  # activation + mask scratch
    slab = sum(nbytes(a) for a in (
        wqkv_b, params['bqkv'], wo_b, params['bo'],
        params['g1'], params['beta1'], w1_b, params['b1'],
        w2_b, params['b2'], params['g2'], params['beta2'])) // L
    vmem_limit = int(min(64 * 2**20, max(32 * 2**20, int(1.5 * (resident + 2 * slab)))))

    out = pl.pallas_call(
        kernel,
        out_shape=jax.ShapeDtypeStruct((T, Op), jnp.float32),
        grid_spec=pltpu.PrefetchScalarGridSpec(
            num_scalar_prefetch=0,
            grid=(L,),
            in_specs=[
                const2d(T, I),            # src (flattened, batch-major)
                const2d(T, H),            # positional encoding (pre-tiled)
                const2d(I, H),            # embed weight (bf16)
                const2d(1, H),            # embed bias
                per_layer(H, 3 * H),      # wqkv (bf16)
                per_layer(1, 3 * H),      # bqkv
                per_layer(H, H),          # wo (bf16)
                per_layer(1, H),          # bo
                per_layer(1, H),          # ln1 gamma
                per_layer(1, H),          # ln1 beta
                per_layer(H, F),          # ffn w1 (bf16)
                per_layer(1, F),          # ffn b1
                per_layer(F, H),          # ffn w2 (bf16)
                per_layer(1, H),          # ffn b2
                per_layer(1, H),          # ln2 gamma
                per_layer(1, H),          # ln2 beta
                const2d(H, Op),           # output weight (lane-padded, bf16)
                const2d(1, Op),           # output bias  (lane-padded)
            ],
            out_specs=pl.BlockSpec((T, Op), lambda l: (0, 0)),   # resident accumulator block
            scratch_shapes=[pltpu.VMEM((T, H), jnp.float32),     # activation across layers
                            pltpu.VMEM((S, S), jnp.float32)],    # causal mask (built once)
        ),
        compiler_params=pltpu.CompilerParams(
            dimension_semantics=("arbitrary",),                  # layer axis is sequential
            vmem_limit_bytes=vmem_limit),
    )(src_flat, pe_full, we_b, be,
      wqkv_b, params['bqkv'], wo_b, params['bo'],
      params['g1'], params['beta1'], w1_b, params['b1'],
      w2_b, params['b2'], params['g2'], params['beta2'],
      wout_p, bout_p)

    # slice off lane padding and restore (S, N, O) layout
    return out[:, :O].reshape(N, S, O).transpose(1, 0, 2)


if __name__ == "__main__":
    # Small shapes consistent with the module's forward: src is (seq, batch, input_size).
    S, N = 8, 2
    input_size, output_size, hidden_size = 16, 8, 32
    n_layers, dim_feedforward, nhead = 2, 64, 4   # head_dim = 8

    key = jax.random.PRNGKey(0)
    kp, kx = jax.random.split(key)
    params = init_params(kp, input_size, output_size, hidden_size, n_layers, dim_feedforward)
    src = jax.random.normal(kx, (S, N, input_size), dtype=jnp.float32)

    fwd = jax.jit(functools.partial(transformer_forward, hidden_size=hidden_size, nhead=nhead))
    out = fwd(src, params)
    out = jax.block_until_ready(out)

    assert out.shape == (S, N, output_size), out.shape
    assert bool(jnp.all(jnp.isfinite(out)))
    print("KERNEL_OK")
</pallas_src>

<mosaic_0001>
module attributes {stable_mosaic.version = 11 : i64} {
  func.func @fused_transformer_kernel(%arg0: i32, %arg1: memref<16x16xf32, #tpu.memory_space<vmem>>, %arg2: memref<16x32xf32, #tpu.memory_space<vmem>>, %arg3: memref<16x32xbf16, #tpu.memory_space<vmem>>, %arg4: memref<1x32xf32, #tpu.memory_space<vmem>>, %arg5: memref<1x32x96xbf16, #tpu.memory_space<vmem>>, %arg6: memref<1x1x96xf32, #tpu.memory_space<vmem>>, %arg7: memref<1x32x32xbf16, #tpu.memory_space<vmem>>, %arg8: memref<1x1x32xf32, #tpu.memory_space<vmem>>, %arg9: memref<1x1x32xf32, #tpu.memory_space<vmem>>, %arg10: memref<1x1x32xf32, #tpu.memory_space<vmem>>, %arg11: memref<1x32x64xbf16, #tpu.memory_space<vmem>>, %arg12: memref<1x1x64xf32, #tpu.memory_space<vmem>>, %arg13: memref<1x64x32xbf16, #tpu.memory_space<vmem>>, %arg14: memref<1x1x32xf32, #tpu.memory_space<vmem>>, %arg15: memref<1x1x32xf32, #tpu.memory_space<vmem>>, %arg16: memref<1x1x32xf32, #tpu.memory_space<vmem>>, %arg17: memref<32x128xbf16, #tpu.memory_space<vmem>>, %arg18: memref<1x128xf32, #tpu.memory_space<vmem>>, %arg19: memref<16x128xf32, #tpu.memory_space<vmem>>, %arg20: memref<16x32xf32, #tpu.memory_space<vmem>>, %arg21: memref<8x8xf32, #tpu.memory_space<vmem>>) attributes {dimension_semantics = [#tpu.dimension_semantics<arbitrary>], iteration_bounds = array<i64: 2>, scalar_prefetch = 0 : i64, scratch_operands = 2 : i64, tpu.core_type = #tpu.core_type<tc>, window_params = [{pipeline_mode = #tpu.pipeline_mode<synchronous>, transform_indices = @transform_0, window_bounds = array<i64: 16, 16>}, {pipeline_mode = #tpu.pipeline_mode<synchronous>, transform_indices = @transform_1, window_bounds = array<i64: 16, 32>}, {pipeline_mode = #tpu.pipeline_mode<synchronous>, transform_indices = @transform_2, window_bounds = array<i64: 16, 32>}, {pipeline_mode = #tpu.pipeline_mode<synchronous>, transform_indices = @transform_3, window_bounds = array<i64: 1, 32>}, {transform_indices = @transform_4, window_bounds = array<i64: 1, 32, 96>}, {transform_indices = @transform_5, window_bounds = array<i64: 1, 1, 96>}, {transform_indices = @transform_6, window_bounds = array<i64: 1, 32, 32>}, {transform_indices = @transform_7, window_bounds = array<i64: 1, 1, 32>}, {transform_indices = @transform_8, window_bounds = array<i64: 1, 1, 32>}, {transform_indices = @transform_9, window_bounds = array<i64: 1, 1, 32>}, {transform_indices = @transform_10, window_bounds = array<i64: 1, 32, 64>}, {transform_indices = @transform_11, window_bounds = array<i64: 1, 1, 64>}, {transform_indices = @transform_12, window_bounds = array<i64: 1, 64, 32>}, {transform_indices = @transform_13, window_bounds = array<i64: 1, 1, 32>}, {transform_indices = @transform_14, window_bounds = array<i64: 1, 1, 32>}, {transform_indices = @transform_15, window_bounds = array<i64: 1, 1, 32>}, {pipeline_mode = #tpu.pipeline_mode<synchronous>, transform_indices = @transform_16, window_bounds = array<i64: 32, 128>}, {pipeline_mode = #tpu.pipeline_mode<synchronous>, transform_indices = @transform_17, window_bounds = array<i64: 1, 128>}, {pipeline_mode = #tpu.pipeline_mode<synchronous>, transform_indices = @transform_18, window_bounds = array<i64: 16, 128>}]} {
    %c0_i32 = arith.constant 0 : i32
    %0 = arith.cmpi eq, %arg0, %c0_i32 : i32
    %1 = arith.extui %0 : i1 to i32
    %c0_i32_0 = arith.constant 0 : i32
    %2 = arith.cmpi ne, %1, %c0_i32_0 : i32
    scf.if %2 {
      %c0_77 = arith.constant 0 : index
      %c0_78 = arith.constant 0 : index
      %206 = vector.load %arg1[%c0_77, %c0_78] : memref<16x16xf32, #tpu.memory_space<vmem>>, vector<16x16xf32>
      %207 = arith.truncf %206 : vector<16x16xf32> to vector<16x16xbf16>
      %c0_79 = arith.constant 0 : index
      %c0_80 = arith.constant 0 : index
      %208 = vector.load %arg3[%c0_79, %c0_80] : memref<16x32xbf16, #tpu.memory_space<vmem>>, vector<16x32xbf16>
      %cst_81 = arith.constant dense<0.000000e+00> : vector<16x32xf32>
      %209 = tpu.matmul %207, %208, %cst_81 {dimension_numbers = #tpu.dot_dimension_numbers<[1], [0], [0], [1], [0, 0, 1, 1], [], []>} : vector<16x16xbf16>, vector<16x32xbf16>, vector<16x32xf32> -> vector<16x32xf32>
      %c0_82 = arith.constant 0 : index
      %c0_83 = arith.constant 0 : index
      %210 = vector.load %arg4[%c0_82, %c0_83] : memref<1x32xf32, #tpu.memory_space<vmem>>, vector<1x32xf32>
      %211 = vector.broadcast %210 : vector<1x32xf32> to vector<16x32xf32>
      %212 = arith.addf %209, %211 : vector<16x32xf32>
      %cst_84 = arith.constant 0.000000e+00 : f32
      %213 = vector.broadcast %cst_84 : f32 to vector<16x32xf32>
      %214 = arith.cmpf oge, %212, %213 : vector<16x32xf32>
      %cst_85 = arith.constant 0.00999999977 : f32
      %215 = vector.broadcast %cst_85 : f32 to vector<16x32xf32>
      %216 = arith.mulf %215, %212 : vector<16x32xf32>
      %217 = arith.select %214, %212, %216 : vector<16x32xi1>, vector<16x32xf32>
      %cst_86 = arith.constant 5.65685415 : f32
      %218 = vector.broadcast %cst_86 : f32 to vector<16x32xf32>
      %219 = arith.mulf %217, %218 : vector<16x32xf32>
      %c0_87 = arith.constant 0 : index
      %c0_88 = arith.constant 0 : index
      %220 = vector.load %arg2[%c0_87, %c0_88] : memref<16x32xf32, #tpu.memory_space<vmem>>, vector<16x32xf32>
      %221 = arith.addf %219, %220 : vector<16x32xf32>
      %c0_89 = arith.constant 0 : index
      %c0_90 = arith.constant 0 : index
      %222 = vector.load %arg20[%c0_89, %c0_90] : memref<16x32xf32, #tpu.memory_space<vmem>>, vector<16x32xf32>
      tpu.vector_store %arg20[%c0_89, %c0_90], %221 {strides = array<i32>} : memref<16x32xf32, #tpu.memory_space<vmem>>, vector<16x32xf32>,
      %223 = tpu.iota {dimensions = array<i32: 0>} : vector<8x8xi32>
      %224 = tpu.iota {dimensions = array<i32: 1>} : vector<8x8xi32>
      %225 = arith.cmpi sge, %223, %224 : vector<8x8xi32>
      %cst_91 = arith.constant 0.000000e+00 : f32
      %cst_92 = arith.constant -1.000000e+30 : f32
      %226 = vector.broadcast %cst_91 : f32 to vector<8x8xf32>
      %227 = vector.broadcast %cst_92 : f32 to vector<8x8xf32>
      %228 = arith.select %225, %226, %227 : vector<8x8xi1>, vector<8x8xf32>
      %c0_93 = arith.constant 0 : index
      %c0_94 = arith.constant 0 : index
      %229 = vector.load %arg21[%c0_93, %c0_94] : memref<8x8xf32, #tpu.memory_space<vmem>>, vector<8x8xf32>
      tpu.vector_store %arg21[%c0_93, %c0_94], %228 {strides = array<i32>} : memref<8x8xf32, #tpu.memory_space<vmem>>, vector<8x8xf32>,
    } else {
    }
    %c0 = arith.constant 0 : index
    %c0_1 = arith.constant 0 : index
    %3 = vector.load %arg20[%c0, %c0_1] : memref<16x32xf32, #tpu.memory_space<vmem>>, vector<16x32xf32>
    %c0_2 = arith.constant 0 : index
    %c0_3 = arith.constant 0 : index
    %4 = vector.load %arg21[%c0_2, %c0_3] : memref<8x8xf32, #tpu.memory_space<vmem>>, vector<8x8xf32>
    %5 = arith.truncf %3 : vector<16x32xf32> to vector<16x32xbf16>
    %c0_4 = arith.constant 0 : index
    %c0_5 = arith.constant 0 : index
    %c0_6 = arith.constant 0 : index
    %6 = vector.load %arg5[%c0_4, %c0_5, %c0_6] : memref<1x32x96xbf16, #tpu.memory_space<vmem>>, vector<1x32x96xbf16>
    %7 = vector.shape_cast %6 : vector<1x32x96xbf16> to vector<32x96xbf16>
    %cst = arith.constant dense<0.000000e+00> : vector<16x96xf32>
    %8 = tpu.matmul %5, %7, %cst {dimension_numbers = #tpu.dot_dimension_numbers<[1], [0], [0], [1], [0, 0, 1, 1], [], []>} : vector<16x32xbf16>, vector<32x96xbf16>, vector<16x96xf32> -> vector<16x96xf32>
    %c0_7 = arith.constant 0 : index
    %c0_8 = arith.constant 0 : index
    %c0_9 = arith.constant 0 : index
    %9 = vector.load %arg6[%c0_7, %c0_8, %c0_9] : memref<1x1x96xf32, #tpu.memory_space<vmem>>, vector<1x1x96xf32>
    %10 = vector.shape_cast %9 : vector<1x1x96xf32> to vector<1x96xf32>
    %11 = vector.broadcast %10 : vector<1x96xf32> to vector<16x96xf32>
    %12 = arith.addf %8, %11 : vector<16x96xf32>
    %13 = vector.extract_strided_slice %12 {offsets = [0, 0], sizes = [16, 8], strides = [1, 1]} : vector<16x96xf32> to vector<16x8xf32>
    %14 = vector.shape_cast %13 : vector<16x8xf32> to vector<2x8x8xf32>
    %15 = arith.truncf %14 : vector<2x8x8xf32> to vector<2x8x8xbf16>
    %16 = vector.extract_strided_slice %12 {offsets = [0, 32], sizes = [16, 8], strides = [1, 1]} : vector<16x96xf32> to vector<16x8xf32>
    %17 = vector.shape_cast %16 : vector<16x8xf32> to vector<2x8x8xf32>
    %18 = arith.truncf %17 : vector<2x8x8xf32> to vector<2x8x8xbf16>
    %19 = vector.extract_strided_slice %12 {offsets = [0, 64], sizes = [16, 8], strides = [1, 1]} : vector<16x96xf32> to vector<16x8xf32>
    %20 = vector.shape_cast %19 : vector<16x8xf32> to vector<2x8x8xf32>
    %21 = arith.truncf %20 : vector<2x8x8xf32> to vector<2x8x8xbf16>
    "tpu.trace_start"() <{level = 10 : i32, message = "nqd,nkd->nqk"}> : () -> ()
    %cst_10 = arith.constant dense<0.000000e+00> : vector<2x8x8xf32>
    %22 = tpu.matmul %15, %18, %cst_10 {dimension_numbers = #tpu.dot_dimension_numbers<[2], [2], [1], [1], [0, 0, 0, 1, 1, 1], [0], [0]>} : vector<2x8x8xbf16>, vector<2x8x8xbf16>, vector<2x8x8xf32> -> vector<2x8x8xf32>
    "tpu.trace_stop"() : () -> ()
    %cst_11 = arith.constant 0.353553385 : f32
    %23 = vector.broadcast %cst_11 : f32 to vector<2x8x8xf32>
    %24 = arith.mulf %22, %23 : vector<2x8x8xf32>
    %25 = vector.shape_cast %4 : vector<8x8xf32> to vector<1x8x8xf32>
    %26 = vector.broadcast %25 : vector<1x8x8xf32> to vector<2x8x8xf32>
    %27 = arith.addf %24, %26 : vector<2x8x8xf32>
    %cst_12 = arith.constant dense<0xFF800000> : vector<2x8xf32>
    %28 = vector.multi_reduction <maximumf>, %27, %cst_12 [2] : vector<2x8x8xf32> to vector<2x8xf32>
    %29 = vector.shape_cast %28 : vector<2x8xf32> to vector<2x8x1xf32>
    %30 = vector.broadcast %29 : vector<2x8x1xf32> to vector<2x8x8xf32>
    %31 = arith.subf %27, %30 : vector<2x8x8xf32>
    %32 = math.exp %31 : vector<2x8x8xf32>
    %cst_13 = arith.constant dense<0.000000e+00> : vector<2x8xf32>
    %33 = vector.multi_reduction <add>, %32, %cst_13 [2] : vector<2x8x8xf32> to vector<2x8xf32>
    %34 = vector.shape_cast %33 : vector<2x8xf32> to vector<2x8x1xf32>
    %35 = tpu.reciprocal %34 {approx = true} : vector<2x8x1xf32> -> vector<2x8x1xf32>
    %36 = vector.broadcast %35 : vector<2x8x1xf32> to vector<2x8x8xf32>
    %37 = arith.mulf %32, %36 : vector<2x8x8xf32>
    %38 = arith.truncf %37 : vector<2x8x8xf32> to vector<2x8x8xbf16>
    "tpu.trace_start"() <{level = 10 : i32, message = "nqk,nkd->nqd"}> : () -> ()
    %cst_14 = arith.constant dense<0.000000e+00> : vector<2x8x8xf32>
    %39 = tpu.matmul %38, %21, %cst_14 {dimension_numbers = #tpu.dot_dimension_numbers<[2], [1], [1], [2], [0, 0, 0, 1, 1, 2], [0], [0]>} : vector<2x8x8xbf16>, vector<2x8x8xbf16>, vector<2x8x8xf32> -> vector<2x8x8xf32>
    "tpu.trace_stop"() : () -> ()
    %40 = vector.shape_cast %39 : vector<2x8x8xf32> to vector<16x8xf32>
    %41 = vector.extract_strided_slice %12 {offsets = [0, 8], sizes = [16, 8], strides = [1, 1]} : vector<16x96xf32> to vector<16x8xf32>
    %42 = vector.shape_cast %41 : vector<16x8xf32> to vector<2x8x8xf32>
    %43 = arith.truncf %42 : vector<2x8x8xf32> to vector<2x8x8xbf16>
    %44 = vector.extract_strided_slice %12 {offsets = [0, 40], sizes = [16, 8], strides = [1, 1]} : vector<16x96xf32> to vector<16x8xf32>
    %45 = vector.shape_cast %44 : vector<16x8xf32> to vector<2x8x8xf32>
    %46 = arith.truncf %45 : vector<2x8x8xf32> to vector<2x8x8xbf16>
    %47 = vector.extract_strided_slice %12 {offsets = [0, 72], sizes = [16, 8], strides = [1, 1]} : vector<16x96xf32> to vector<16x8xf32>
    %48 = vector.shape_cast %47 : vector<16x8xf32> to vector<2x8x8xf32>
    %49 = arith.truncf %48 : vector<2x8x8xf32> to vector<2x8x8xbf16>
    "tpu.trace_start"() <{level = 10 : i32, message = "nqd,nkd->nqk"}> : () -> ()
    %cst_15 = arith.constant dense<0.000000e+00> : vector<2x8x8xf32>
    %50 = tpu.matmul %43, %46, %cst_15 {dimension_numbers = #tpu.dot_dimension_numbers<[2], [2], [1], [1], [0, 0, 0, 1, 1, 1], [0], [0]>} : vector<2x8x8xbf16>, vector<2x8x8xbf16>, vector<2x8x8xf32> -> vector<2x8x8xf32>
    "tpu.trace_stop"() : () -> ()
    %cst_16 = arith.constant 0.353553385 : f32
    %51 = vector.broadcast %cst_16 : f32 to vector<2x8x8xf32>
    %52 = arith.mulf %50, %51 : vector<2x8x8xf32>
    %53 = vector.shape_cast %4 : vector<8x8xf32> to vector<1x8x8xf32>
    %54 = vector.broadcast %53 : vector<1x8x8xf32> to vector<2x8x8xf32>
    %55 = arith.addf %52, %54 : vector<2x8x8xf32>
    %cst_17 = arith.constant dense<0xFF800000> : vector<2x8xf32>
    %56 = vector.multi_reduction <maximumf>, %55, %cst_17 [2] : vector<2x8x8xf32> to vector<2x8xf32>
    %57 = vector.shape_cast %56 : vector<2x8xf32> to vector<2x8x1xf32>
    %58 = vector.broadcast %57 : vector<2x8x1xf32> to vector<2x8x8xf32>
    %59 = arith.subf %55, %58 : vector<2x8x8xf32>
    %60 = math.exp %59 : vector<2x8x8xf32>
    %cst_18 = arith.constant dense<0.000000e+00> : vector<2x8xf32>
    %61 = vector.multi_reduction <add>, %60, %cst_18 [2] : vector<2x8x8xf32> to vector<2x8xf32>
    %62 = vector.shape_cast %61 : vector<2x8xf32> to vector<2x8x1xf32>
    %63 = tpu.reciprocal %62 {approx = true} : vector<2x8x1xf32> -> vector<2x8x1xf32>
    %64 = vector.broadcast %63 : vector<2x8x1xf32> to vector<2x8x8xf32>
    %65 = arith.mulf %60, %64 : vector<2x8x8xf32>
    %66 = arith.truncf %65 : vector<2x8x8xf32> to vector<2x8x8xbf16>
    "tpu.trace_start"() <{level = 10 : i32, message = "nqk,nkd->nqd"}> : () -> ()
    %cst_19 = arith.constant dense<0.000000e+00> : vector<2x8x8xf32>
    %67 = tpu.matmul %66, %49, %cst_19 {dimension_numbers = #tpu.dot_dimension_numbers<[2], [1], [1], [2], [0, 0, 0, 1, 1, 2], [0], [0]>} : vector<2x8x8xbf16>, vector<2x8x8xbf16>, vector<2x8x8xf32> -> vector<2x8x8xf32>
    "tpu.trace_stop"() : () -> ()
    %68 = vector.shape_cast %67 : vector<2x8x8xf32> to vector<16x8xf32>
    %69 = vector.extract_strided_slice %12 {offsets = [0, 16], sizes = [16, 8], strides = [1, 1]} : vector<16x96xf32> to vector<16x8xf32>
    %70 = vector.shape_cast %69 : vector<16x8xf32> to vector<2x8x8xf32>
    %71 = arith.truncf %70 : vector<2x8x8xf32> to vector<2x8x8xbf16>
    %72 = vector.extract_strided_slice %12 {offsets = [0, 48], sizes = [16, 8], strides = [1, 1]} : vector<16x96xf32> to vector<16x8xf32>
    %73 = vector.shape_cast %72 : vector<16x8xf32> to vector<2x8x8xf32>
    %74 = arith.truncf %73 : vector<2x8x8xf32> to vector<2x8x8xbf16>
    %75 = vector.extract_strided_slice %12 {offsets = [0, 80], sizes = [16, 8], strides = [1, 1]} : vector<16x96xf32> to vector<16x8xf32>
    %76 = vector.shape_cast %75 : vector<16x8xf32> to vector<2x8x8xf32>
    %77 = arith.truncf %76 : vector<2x8x8xf32> to vector<2x8x8xbf16>
    "tpu.trace_start"() <{level = 10 : i32, message = "nqd,nkd->nqk"}> : () -> ()
    %cst_20 = arith.constant dense<0.000000e+00> : vector<2x8x8xf32>
    %78 = tpu.matmul %71, %74, %cst_20 {dimension_numbers = #tpu.dot_dimension_numbers<[2], [2], [1], [1], [0, 0, 0, 1, 1, 1], [0], [0]>} : vector<2x8x8xbf16>, vector<2x8x8xbf16>, vector<2x8x8xf32> -> vector<2x8x8xf32>
    "tpu.trace_stop"() : () -> ()
    %cst_21 = arith.constant 0.353553385 : f32
    %79 = vector.broadcast %cst_21 : f32 to vector<2x8x8xf32>
    %80 = arith.mulf %78, %79 : vector<2x8x8xf32>
    %81 = vector.shape_cast %4 : vector<8x8xf32> to vector<1x8x8xf32>
    %82 = vector.broadcast %81 : vector<1x8x8xf32> to vector<2x8x8xf32>
    %83 = arith.addf %80, %82 : vector<2x8x8xf32>
    %cst_22 = arith.constant dense<0xFF800000> : vector<2x8xf32>
    %84 = vector.multi_reduction <maximumf>, %83, %cst_22 [2] : vector<2x8x8xf32> to vector<2x8xf32>
    %85 = vector.shape_cast %84 : vector<2x8xf32> to vector<2x8x1xf32>
    %86 = vector.broadcast %85 : vector<2x8x1xf32> to vector<2x8x8xf32>
    %87 = arith.subf %83, %86 : vector<2x8x8xf32>
    %88 = math.exp %87 : vector<2x8x8xf32>
    %cst_23 = arith.constant dense<0.000000e+00> : vector<2x8xf32>
    %89 = vector.multi_reduction <add>, %88, %cst_23 [2] : vector<2x8x8xf32> to vector<2x8xf32>
    %90 = vector.shape_cast %89 : vector<2x8xf32> to vector<2x8x1xf32>
    %91 = tpu.reciprocal %90 {approx = true} : vector<2x8x1xf32> -> vector<2x8x1xf32>
    %92 = vector.broadcast %91 : vector<2x8x1xf32> to vector<2x8x8xf32>
    %93 = arith.mulf %88, %92 : vector<2x8x8xf32>
    %94 = arith.truncf %93 : vector<2x8x8xf32> to vector<2x8x8xbf16>
    "tpu.trace_start"() <{level = 10 : i32, message = "nqk,nkd->nqd"}> : () -> ()
    %cst_24 = arith.constant dense<0.000000e+00> : vector<2x8x8xf32>
    %95 = tpu.matmul %94, %77, %cst_24 {dimension_numbers = #tpu.dot_dimension_numbers<[2], [1], [1], [2], [0, 0, 0, 1, 1, 2], [0], [0]>} : vector<2x8x8xbf16>, vector<2x8x8xbf16>, vector<2x8x8xf32> -> vector<2x8x8xf32>
    "tpu.trace_stop"() : () -> ()
    %96 = vector.shape_cast %95 : vector<2x8x8xf32> to vector<16x8xf32>
    %97 = vector.extract_strided_slice %12 {offsets = [0, 24], sizes = [16, 8], strides = [1, 1]} : vector<16x96xf32> to vector<16x8xf32>
    %98 = vector.shape_cast %97 : vector<16x8xf32> to vector<2x8x8xf32>
    %99 = arith.truncf %98 : vector<2x8x8xf32> to vector<2x8x8xbf16>
    %100 = vector.extract_strided_slice %12 {offsets = [0, 56], sizes = [16, 8], strides = [1, 1]} : vector<16x96xf32> to vector<16x8xf32>
    %101 = vector.shape_cast %100 : vector<16x8xf32> to vector<2x8x8xf32>
    %102 = arith.truncf %101 : vector<2x8x8xf32> to vector<2x8x8xbf16>
    %103 = vector.extract_strided_slice %12 {offsets = [0, 88], sizes = [16, 8], strides = [1, 1]} : vector<16x96xf32> to vector<16x8xf32>
    %104 = vector.shape_cast %103 : vector<16x8xf32> to vector<2x8x8xf32>
    %105 = arith.truncf %104 : vector<2x8x8xf32> to vector<2x8x8xbf16>
    "tpu.trace_start"() <{level = 10 : i32, message = "nqd,nkd->nqk"}> : () -> ()
    %cst_25 = arith.constant dense<0.000000e+00> : vector<2x8x8xf32>
    %106 = tpu.matmul %99, %102, %cst_25 {dimension_numbers = #tpu.dot_dimension_numbers<[2], [2], [1], [1], [0, 0, 0, 1, 1, 1], [0], [0]>} : vector<2x8x8xbf16>, vector<2x8x8xbf16>, vector<2x8x8xf32> -> vector<2x8x8xf32>
    "tpu.trace_stop"() : () -> ()
    %cst_26 = arith.constant 0.353553385 : f32
    %107 = vector.broadcast %cst_26 : f32 to vector<2x8x8xf32>
    %108 = arith.mulf %106, %107 : vector<2x8x8xf32>
    %109 = vector.shape_cast %4 : vector<8x8xf32> to vector<1x8x8xf32>
    %110 = vector.broadcast %109 : vector<1x8x8xf32> to vector<2x8x8xf32>
    %111 = arith.addf %108, %110 : vector<2x8x8xf32>
    %cst_27 = arith.constant dense<0xFF800000> : vector<2x8xf32>
    %112 = vector.multi_reduction <maximumf>, %111, %cst_27 [2] : vector<2x8x8xf32> to vector<2x8xf32>
    %113 = vector.shape_cast %112 : vector<2x8xf32> to vector<2x8x1xf32>
    %114 = vector.broadcast %113 : vector<2x8x1xf32> to vector<2x8x8xf32>
    %115 = arith.subf %111, %114 : vector<2x8x8xf32>
    %116 = math.exp %115 : vector<2x8x8xf32>
    %cst_28 = arith.constant dense<0.000000e+00> : vector<2x8xf32>
    %117 = vector.multi_reduction <add>, %116, %cst_28 [2] : vector<2x8x8xf32> to vector<2x8xf32>
    %118 = vector.shape_cast %117 : vector<2x8xf32> to vector<2x8x1xf32>
    %119 = tpu.reciprocal %118 {approx = true} : vector<2x8x1xf32> -> vector<2x8x1xf32>
    %120 = vector.broadcast %119 : vector<2x8x1xf32> to vector<2x8x8xf32>
    %121 = arith.mulf %116, %120 : vector<2x8x8xf32>
    %122 = arith.truncf %121 : vector<2x8x8xf32> to vector<2x8x8xbf16>
    "tpu.trace_start"() <{level = 10 : i32, message = "nqk,nkd->nqd"}> : () -> ()
    %cst_29 = arith.constant dense<0.000000e+00> : vector<2x8x8xf32>
    %123 = tpu.matmul %122, %105, %cst_29 {dimension_numbers = #tpu.dot_dimension_numbers<[2], [1], [1], [2], [0, 0, 0, 1, 1, 2], [0], [0]>} : vector<2x8x8xbf16>, vector<2x8x8xbf16>, vector<2x8x8xf32> -> vector<2x8x8xf32>
    "tpu.trace_stop"() : () -> ()
    %124 = vector.shape_cast %123 : vector<2x8x8xf32> to vector<16x8xf32>
    %125 = tpu.concatenate %40, %68, %96, %124 in 1 : vector<16x8xf32>, vector<16x8xf32>, vector<16x8xf32>, vector<16x8xf32> -> vector<16x32xf32>
    %126 = arith.truncf %125 : vector<16x32xf32> to vector<16x32xbf16>
    %c0_30 = arith.constant 0 : index
    %c0_31 = arith.constant 0 : index
    %c0_32 = arith.constant 0 : index
    %127 = vector.load %arg7[%c0_30, %c0_31, %c0_32] : memref<1x32x32xbf16, #tpu.memory_space<vmem>>, vector<1x32x32xbf16>
    %128 = vector.shape_cast %127 : vector<1x32x32xbf16> to vector<32x32xbf16>
    %cst_33 = arith.constant dense<0.000000e+00> : vector<16x32xf32>
    %129 = tpu.matmul %126, %128, %cst_33 {dimension_numbers = #tpu.dot_dimension_numbers<[1], [0], [0], [1], [0, 0, 1, 1], [], []>} : vector<16x32xbf16>, vector<32x32xbf16>, vector<16x32xf32> -> vector<16x32xf32>
    %c0_34 = arith.constant 0 : index
    %c0_35 = arith.constant 0 : index
    %c0_36 = arith.constant 0 : index
    %130 = vector.load %arg8[%c0_34, %c0_35, %c0_36] : memref<1x1x32xf32, #tpu.memory_space<vmem>>, vector<1x1x32xf32>
    %131 = vector.shape_cast %130 : vector<1x1x32xf32> to vector<1x32xf32>
    %132 = vector.broadcast %131 : vector<1x32xf32> to vector<16x32xf32>
    %133 = arith.addf %129, %132 : vector<16x32xf32>
    %134 = arith.addf %133, %3 : vector<16x32xf32>
    %c0_37 = arith.constant 0 : index
    %c0_38 = arith.constant 0 : index
    %c0_39 = arith.constant 0 : index
    %135 = vector.load %arg9[%c0_37, %c0_38, %c0_39] : memref<1x1x32xf32, #tpu.memory_space<vmem>>, vector<1x1x32xf32>
    %136 = vector.shape_cast %135 : vector<1x1x32xf32> to vector<1x32xf32>
    %c0_40 = arith.constant 0 : index
    %c0_41 = arith.constant 0 : index
    %c0_42 = arith.constant 0 : index
    %137 = vector.load %arg10[%c0_40, %c0_41, %c0_42] : memref<1x1x32xf32, #tpu.memory_space<vmem>>, vector<1x1x32xf32>
    %138 = vector.shape_cast %137 : vector<1x1x32xf32> to vector<1x32xf32>
    %cst_43 = arith.constant dense<0.000000e+00> : vector<16xf32>
    %139 = vector.multi_reduction <add>, %134, %cst_43 [1] : vector<16x32xf32> to vector<16xf32>
    %140 = vector.shape_cast %139 : vector<16xf32> to vector<16x1xf32>
    %cst_44 = arith.constant 3.200000e+01 : f32
    %141 = vector.broadcast %cst_44 : f32 to vector<16x1xf32>
    %142 = arith.divf %140, %141 : vector<16x1xf32>
    %143 = vector.broadcast %142 : vector<16x1xf32> to vector<16x32xf32>
    %144 = arith.subf %134, %143 : vector<16x32xf32>
    %145 = arith.mulf %144, %144 : vector<16x32xf32>
    %cst_45 = arith.constant dense<0.000000e+00> : vector<16xf32>
    %146 = vector.multi_reduction <add>, %145, %cst_45 [1] : vector<16x32xf32> to vector<16xf32>
    %147 = vector.shape_cast %146 : vector<16xf32> to vector<16x1xf32>
    %cst_46 = arith.constant 3.200000e+01 : f32
    %148 = vector.broadcast %cst_46 : f32 to vector<16x1xf32>
    %149 = arith.divf %147, %148 : vector<16x1xf32>
    %cst_47 = arith.constant 9.99999974E-6 : f32
    %150 = vector.broadcast %cst_47 : f32 to vector<16x1xf32>
    %151 = arith.addf %149, %150 : vector<16x1xf32>
    %152 = math.rsqrt %151 : vector<16x1xf32>
    %153 = vector.broadcast %152 : vector<16x1xf32> to vector<16x32xf32>
    %154 = arith.mulf %144, %153 : vector<16x32xf32>
    %155 = vector.broadcast %136 : vector<1x32xf32> to vector<16x32xf32>
    %156 = arith.mulf %154, %155 : vector<16x32xf32>
    %157 = vector.broadcast %138 : vector<1x32xf32> to vector<16x32xf32>
    %158 = arith.addf %156, %157 : vector<16x32xf32>
    %159 = arith.truncf %158 : vector<16x32xf32> to vector<16x32xbf16>
    %c0_48 = arith.constant 0 : index
    %c0_49 = arith.constant 0 : index
    %c0_50 = arith.constant 0 : index
    %160 = vector.load %arg11[%c0_48, %c0_49, %c0_50] : memref<1x32x64xbf16, #tpu.memory_space<vmem>>, vector<1x32x64xbf16>
    %161 = vector.shape_cast %160 : vector<1x32x64xbf16> to vector<32x64xbf16>
    %cst_51 = arith.constant dense<0.000000e+00> : vector<16x64xf32>
    %162 = tpu.matmul %159, %161, %cst_51 {dimension_numbers = #tpu.dot_dimension_numbers<[1], [0], [0], [1], [0, 0, 1, 1], [], []>} : vector<16x32xbf16>, vector<32x64xbf16>, vector<16x64xf32> -> vector<16x64xf32>
    %c0_52 = arith.constant 0 : index
    %c0_53 = arith.constant 0 : index
    %c0_54 = arith.constant 0 : index
    %163 = vector.load %arg12[%c0_52, %c0_53, %c0_54] : memref<1x1x64xf32, #tpu.memory_space<vmem>>, vector<1x1x64xf32>
    %164 = vector.shape_cast %163 : vector<1x1x64xf32> to vector<1x64xf32>
    %165 = vector.broadcast %164 : vector<1x64xf32> to vector<16x64xf32>
    %166 = arith.addf %162, %165 : vector<16x64xf32>
    %cst_55 = arith.constant 0.000000e+00 : f32
    %167 = vector.broadcast %cst_55 : f32 to vector<16x64xf32>
    %168 = arith.maximumf %166, %167 : vector<16x64xf32>
    %169 = arith.truncf %168 : vector<16x64xf32> to vector<16x64xbf16>
    %c0_56 = arith.constant 0 : index
    %c0_57 = arith.constant 0 : index
    %c0_58 = arith.constant 0 : index
    %170 = vector.load %arg13[%c0_56, %c0_57, %c0_58] : memref<1x64x32xbf16, #tpu.memory_space<vmem>>, vector<1x64x32xbf16>
    %171 = vector.shape_cast %170 : vector<1x64x32xbf16> to vector<64x32xbf16>
    %cst_59 = arith.constant dense<0.000000e+00> : vector<16x32xf32>
    %172 = tpu.matmul %169, %171, %cst_59 {dimension_numbers = #tpu.dot_dimension_numbers<[1], [0], [0], [1], [0, 0, 1, 1], [], []>} : vector<16x64xbf16>, vector<64x32xbf16>, vector<16x32xf32> -> vector<16x32xf32>
    %c0_60 = arith.constant 0 : index
    %c0_61 = arith.constant 0 : index
    %c0_62 = arith.constant 0 : index
    %173 = vector.load %arg14[%c0_60, %c0_61, %c0_62] : memref<1x1x32xf32, #tpu.memory_space<vmem>>, vector<1x1x32xf32>
    %174 = vector.shape_cast %173 : vector<1x1x32xf32> to vector<1x32xf32>
    %175 = vector.broadcast %174 : vector<1x32xf32> to vector<16x32xf32>
    %176 = arith.addf %172, %175 : vector<16x32xf32>
    %177 = arith.addf %176, %158 : vector<16x32xf32>
    %c0_63 = arith.constant 0 : index
    %c0_64 = arith.constant 0 : index
    %c0_65 = arith.constant 0 : index
    %178 = vector.load %arg15[%c0_63, %c0_64, %c0_65] : memref<1x1x32xf32, #tpu.memory_space<vmem>>, vector<1x1x32xf32>
    %179 = vector.shape_cast %178 : vector<1x1x32xf32> to vector<1x32xf32>
    %c0_66 = arith.constant 0 : index
    %c0_67 = arith.constant 0 : index
    %c0_68 = arith.constant 0 : index
    %180 = vector.load %arg16[%c0_66, %c0_67, %c0_68] : memref<1x1x32xf32, #tpu.memory_space<vmem>>, vector<1x1x32xf32>
    %181 = vector.shape_cast %180 : vector<1x1x32xf32> to vector<1x32xf32>
    %cst_69 = arith.constant dense<0.000000e+00> : vector<16xf32>
    %182 = vector.multi_reduction <add>, %177, %cst_69 [1] : vector<16x32xf32> to vector<16xf32>
    %183 = vector.shape_cast %182 : vector<16xf32> to vector<16x1xf32>
    %cst_70 = arith.constant 3.200000e+01 : f32
    %184 = vector.broadcast %cst_70 : f32 to vector<16x1xf32>
    %185 = arith.divf %183, %184 : vector<16x1xf32>
    %186 = vector.broadcast %185 : vector<16x1xf32> to vector<16x32xf32>
    %187 = arith.subf %177, %186 : vector<16x32xf32>
    %188 = arith.mulf %187, %187 : vector<16x32xf32>
    %cst_71 = arith.constant dense<0.000000e+00> : vector<16xf32>
    %189 = vector.multi_reduction <add>, %188, %cst_71 [1] : vector<16x32xf32> to vector<16xf32>
    %190 = vector.shape_cast %189 : vector<16xf32> to vector<16x1xf32>
    %cst_72 = arith.constant 3.200000e+01 : f32
    %191 = vector.broadcast %cst_72 : f32 to vector<16x1xf32>
    %192 = arith.divf %190, %191 : vector<16x1xf32>
    %cst_73 = arith.constant 9.99999974E-6 : f32
    %193 = vector.broadcast %cst_73 : f32 to vector<16x1xf32>
    %194 = arith.addf %192, %193 : vector<16x1xf32>
    %195 = math.rsqrt %194 : vector<16x1xf32>
    %196 = vector.broadcast %195 : vector<16x1xf32> to vector<16x32xf32>
    %197 = arith.mulf %187, %196 : vector<16x32xf32>
    %198 = vector.broadcast %179 : vector<1x32xf32> to vector<16x32xf32>
    %199 = arith.mulf %197, %198 : vector<16x32xf32>
    %200 = vector.broadcast %181 : vector<1x32xf32> to vector<16x32xf32>
    %201 = arith.addf %199, %200 : vector<16x32xf32>
    %c0_74 = arith.constant 0 : index
    %c0_75 = arith.constant 0 : index
    %202 = vector.load %arg20[%c0_74, %c0_75] : memref<16x32xf32, #tpu.memory_space<vmem>>, vector<16x32xf32>
    tpu.vector_store %arg20[%c0_74, %c0_75], %201 {strides = array<i32>} : memref<16x32xf32, #tpu.memory_space<vmem>>, vector<16x32xf32>,
    %c1_i32 = arith.constant 1 : i32
    %203 = arith.cmpi eq, %arg0, %c1_i32 : i32
    %204 = arith.extui %203 : i1 to i32
    %c0_i32_76 = arith.constant 0 : i32
    %205 = arith.cmpi ne, %204, %c0_i32_76 : i32
    scf.if %205 {
      %206 = arith.truncf %201 : vector<16x32xf32> to vector<16x32xbf16>
      %c0_77 = arith.constant 0 : index
      %c0_78 = arith.constant 0 : index
      %207 = vector.load %arg17[%c0_77, %c0_78] : memref<32x128xbf16, #tpu.memory_space<vmem>>, vector<32x128xbf16>
      %cst_79 = arith.constant dense<0.000000e+00> : vector<16x128xf32>
      %208 = tpu.matmul %206, %207, %cst_79 {dimension_numbers = #tpu.dot_dimension_numbers<[1], [0], [0], [1], [0, 0, 1, 1], [], []>} : vector<16x32xbf16>, vector<32x128xbf16>, vector<16x128xf32> -> vector<16x128xf32>
      %c0_80 = arith.constant 0 : index
      %c0_81 = arith.constant 0 : index
      %209 = vector.load %arg18[%c0_80, %c0_81] : memref<1x128xf32, #tpu.memory_space<vmem>>, vector<1x128xf32>
      %210 = vector.broadcast %209 : vector<1x128xf32> to vector<16x128xf32>
      %211 = arith.addf %208, %210 : vector<16x128xf32>
      %212 = math.tanh %211 : vector<16x128xf32>
      %c0_82 = arith.constant 0 : index
      %c0_83 = arith.constant 0 : index
      %213 = vector.load %arg19[%c0_82, %c0_83] : memref<16x128xf32, #tpu.memory_space<vmem>>, vector<16x128xf32>
      tpu.vector_store %arg19[%c0_82, %c0_83], %212 {strides = array<i32>} : memref<16x128xf32, #tpu.memory_space<vmem>>, vector<16x128xf32>,
    } else {
    }
    return
  }
  func.func @transform_0(%arg0: i32) -> (i32, i32) {
    %c0_i32 = arith.constant 0 : i32
    %c0_i32_0 = arith.constant 0 : i32
    %c0_i32_1 = arith.constant 0 : i32
    return %c0_i32, %c0_i32_0 : i32, i32
  }
  func.func @transform_1(%arg0: i32) -> (i32, i32) {
    %c0_i32 = arith.constant 0 : i32
    %c0_i32_0 = arith.constant 0 : i32
    %c0_i32_1 = arith.constant 0 : i32
    return %c0_i32, %c0_i32_0 : i32, i32
  }
  func.func @transform_2(%arg0: i32) -> (i32, i32) {
    %c0_i32 = arith.constant 0 : i32
    %c0_i32_0 = arith.constant 0 : i32
    %c0_i32_1 = arith.constant 0 : i32
    return %c0_i32, %c0_i32_0 : i32, i32
  }
  func.func @transform_3(%arg0: i32) -> (i32, i32) {
    %c0_i32 = arith.constant 0 : i32
    %c0_i32_0 = arith.constant 0 : i32
    %c0_i32_1 = arith.constant 0 : i32
    return %c0_i32, %c0_i32_0 : i32, i32
  }
  func.func @transform_4(%arg0: i32) -> (i32, i32, i32) {
    %c0_i32 = arith.constant 0 : i32
    %c0_i32_0 = arith.constant 0 : i32
    %c0_i32_1 = arith.constant 0 : i32
    return %arg0, %c0_i32, %c0_i32_0 : i32, i32, i32
  }
  func.func @transform_5(%arg0: i32) -> (i32, i32, i32) {
    %c0_i32 = arith.constant 0 : i32
    %c0_i32_0 = arith.constant 0 : i32
    %c0_i32_1 = arith.constant 0 : i32
    return %arg0, %c0_i32, %c0_i32_0 : i32, i32, i32
  }
  func.func @transform_6(%arg0: i32) -> (i32, i32, i32) {
    %c0_i32 = arith.constant 0 : i32
    %c0_i32_0 = arith.constant 0 : i32
    %c0_i32_1 = arith.constant 0 : i32
    return %arg0, %c0_i32, %c0_i32_0 : i32, i32, i32
  }
  func.func @transform_7(%arg0: i32) -> (i32, i32, i32) {
    %c0_i32 = arith.constant 0 : i32
    %c0_i32_0 = arith.constant 0 : i32
    %c0_i32_1 = arith.constant 0 : i32
    return %arg0, %c0_i32, %c0_i32_0 : i32, i32, i32
  }
  func.func @transform_8(%arg0: i32) -> (i32, i32, i32) {
    %c0_i32 = arith.constant 0 : i32
    %c0_i32_0 = arith.constant 0 : i32
    %c0_i32_1 = arith.constant 0 : i32
    return %arg0, %c0_i32, %c0_i32_0 : i32, i32, i32
  }
  func.func @transform_9(%arg0: i32) -> (i32, i32, i32) {
    %c0_i32 = arith.constant 0 : i32
    %c0_i32_0 = arith.constant 0 : i32
    %c0_i32_1 = arith.constant 0 : i32
    return %arg0, %c0_i32, %c0_i32_0 : i32, i32, i32
  }
  func.func @transform_10(%arg0: i32) -> (i32, i32, i32) {
    %c0_i32 = arith.constant 0 : i32
    %c0_i32_0 = arith.constant 0 : i32
    %c0_i32_1 = arith.constant 0 : i32
    return %arg0, %c0_i32, %c0_i32_0 : i32, i32, i32
  }
  func.func @transform_11(%arg0: i32) -> (i32, i32, i32) {
    %c0_i32 = arith.constant 0 : i32
    %c0_i32_0 = arith.constant 0 : i32
    %c0_i32_1 = arith.constant 0 : i32
    return %arg0, %c0_i32, %c0_i32_0 : i32, i32, i32
  }
  func.func @transform_12(%arg0: i32) -> (i32, i32, i32) {
    %c0_i32 = arith.constant 0 : i32
    %c0_i32_0 = arith.constant 0 : i32
    %c0_i32_1 = arith.constant 0 : i32
    return %arg0, %c0_i32, %c0_i32_0 : i32, i32, i32
  }
  func.func @transform_13(%arg0: i32) -> (i32, i32, i32) {
    %c0_i32 = arith.constant 0 : i32
    %c0_i32_0 = arith.constant 0 : i32
    %c0_i32_1 = arith.constant 0 : i32
    return %arg0, %c0_i32, %c0_i32_0 : i32, i32, i32
  }
  func.func @transform_14(%arg0: i32) -> (i32, i32, i32) {
    %c0_i32 = arith.constant 0 : i32
    %c0_i32_0 = arith.constant 0 : i32
    %c0_i32_1 = arith.constant 0 : i32
    return %arg0, %c0_i32, %c0_i32_0 : i32, i32, i32
  }
  func.func @transform_15(%arg0: i32) -> (i32, i32, i32) {
    %c0_i32 = arith.constant 0 : i32
    %c0_i32_0 = arith.constant 0 : i32
    %c0_i32_1 = arith.constant 0 : i32
    return %arg0, %c0_i32, %c0_i32_0 : i32, i32, i32
  }
  func.func @transform_16(%arg0: i32) -> (i32, i32) {
    %c0_i32 = arith.constant 0 : i32
    %c0_i32_0 = arith.constant 0 : i32
    %c0_i32_1 = arith.constant 0 : i32
    return %c0_i32, %c0_i32_0 : i32, i32
  }
  func.func @transform_17(%arg0: i32) -> (i32, i32) {
    %c0_i32 = arith.constant 0 : i32
    %c0_i32_0 = arith.constant 0 : i32
    %c0_i32_1 = arith.constant 0 : i32
    return %c0_i32, %c0_i32_0 : i32, i32
  }
  func.func @transform_18(%arg0: i32) -> (i32, i32) {
    %c0_i32 = arith.constant 0 : i32
    %c0_i32_0 = arith.constant 0 : i32
    %c0_i32_1 = arith.constant 0 : i32
    return %c0_i32, %c0_i32_0 : i32, i32
  }
}

</mosaic_0001>

<bundles_post_ra>
// kernel: transformer_forward.1
= control target key start
LH: loop header
LB: loop body
LE: loop exit
PB: predicated region body
PF: predicated region fallthrough
CT: control target
= control target key end

     0   :  { %s2843_s27 = smov 0   ;;  %s3190_s0 = inlined_call_operand.vmem [shape: f32[16,16], index: 0, kind: input, shape index: {}]   ;;  %s3191_s1 = inlined_call_operand.vmem [shape: f32[16,32], index: 1, kind: input, shape index: {}]   ;;  %s3192_s2 = inlined_call_operand.vmem [shape: bf16[16,32], index: 2, kind: input, shape index: {}]   ;;  %s3193_s3 = inlined_call_operand.vmem [shape: f32[1,32], index: 3, kind: input, shape index: {}]   ;;  %s3194_s4 = inlined_call_operand.vmem [shape: bf16[2,32,96], index: 4, kind: input, shape index: {}]   ;;  %s3195_s5 = inlined_call_operand.vmem [shape: f32[2,1,96], index: 5, kind: input, shape index: {}]   ;;  %s3196_s6 = inlined_call_operand.vmem [shape: bf16[2,32,32], index: 6, kind: input, shape index: {}]   ;;  %s3197_s7 = inlined_call_operand.vmem [shape: f32[2,1,32], index: 7, kind: input, shape index: {}]   ;;  %s3198_s8 = inlined_call_operand.vmem [shape: f32[2,1,32], index: 8, kind: input, shape index: {}]   ;;  %s3199_s9 = inlined_call_operand.vmem [shape: f32[2,1,32], index: 9, kind: input, shape index: {}]   ;;  %s3200_s10 = inlined_call_operand.vmem [shape: bf16[2,32,64], index: 10, kind: input, shape index: {}]   ;;  %s3201_s11 = inlined_call_operand.vmem [shape: f32[2,1,64], index: 11, kind: input, shape index: {}]   ;;  %s3202_s12 = inlined_call_operand.vmem [shape: bf16[2,64,32], index: 12, kind: input, shape index: {}]   ;;  %s3203_s13 = inlined_call_operand.vmem [shape: f32[2,1,32], index: 13, kind: input, shape index: {}]   ;;  %s3204_s14 = inlined_call_operand.vmem [shape: f32[2,1,32], index: 14, kind: input, shape index: {}]   ;;  %s3205_s15 = inlined_call_operand.vmem [shape: f32[2,1,32], index: 15, kind: input, shape index: {}]   ;;  %s3206_s16 = inlined_call_operand.vmem [shape: bf16[32,128], index: 16, kind: input, shape index: {}]   ;;  %s3207_s17 = inlined_call_operand.vmem [shape: f32[1,128], index: 17, kind: input, shape index: {}]   ;;  %s3208_s18 = inlined_call_operand.vmem [shape: f32[16,128], index: 18, kind: output, shape index: {}]  }
   0x1   :  { %3215 = sst [smem:[#allocation6_spill]] %s3190_s0 }
   0x2   :  { %3216 = sst [smem:[#allocation7_spill]] %s3191_s1 }
   0x3   :  { %3217 = sst [smem:[#allocation8_spill]] %s3192_s2 }
   0x4   :  { %3218 = sst [smem:[#allocation9_spill]] %s3194_s4 }
   0x5   :  { %3219 = sst [smem:[#allocation10_spill]] %s3196_s6 }
   0x6   :  { %3220 = sst [smem:[#allocation11_spill]] %s3206_s16 }
   0x7   :  { %3221 = sst [smem:[#allocation12_spill]] %s3207_s17 }
   0x8   :  { %3222 = sst [smem:[#allocation13_spill]] %s3208_s18 }
   0x9 LB: > { %3223 = sst [smem:[#allocation4_spill]] %s2725_s27  ;;  %s2849_s28 = sadd.s32 4294967295, %s2725_s27   ;;  %s2725_s27 = sphi %s2843_s27, %s28_s27  }
   0xa   : > { %p2359_p0 = scmp.ge.s32.totalorder %s2725_s27, 1  ;;  %p601_p1 = scmp.lt.s32.totalorder %s2725_s27, 3 }
   0xc   : > { %p602_p2 = pnand %p2359_p0, %p601_p1 }
   0xe   : > { %605 = sbr.rel (%p602_p2) target bundleno = 4615 (0x1207), region = 92 }
  0x15   : > { %p689_p3 = scmp.lt.s32.totalorder %s2849_s28, 1  ;;  %s3224_s4 = sld [smem:[#allocation9_spill]] }
  0x16   : > { %s3225_s6 = sld [smem:[#allocation10_spill]]  ;;  %p2368_p4 = scmp.ne.s32.totalorder %s2849_s28, 0 }
  0x17   : > { %s2855_s29 = scalar_select %p689_p3, %s2849_s28, 1 }
  0x18   : > { %737 = sbr.rel (%p2368_p4) target bundleno = 263 (0x107), region = 96  ;;  %s3227_s25 = sld [smem:[#allocation8_spill]] (!%p2368_p4)  ;;  %v2727_v1 = vmov (!%p2368_p4), 0.0   ;;  %vm2728_vm0 = vmmov (!%p2368_p4), 0   ;;  %vm756_vm1 = vcmask (!%p2368_p4), 130048   ;;  %v816_v5 = vlaneseq (!%p2368_p4) }
  0x19   : > { %s2417_s30 = sshll.u32 %s2855_s29, 4  ;;  %s726_s0 = scalar_lea.vmem %s3203_s13, %s2855_s29  ;;  %2472 = vmatprep.subr.bf16.mxu0 (!%p2368_p4), %v2727_v1  ;;  %2474 = vmatprep.mubr.msk.bf16.mxu0 (!%p2368_p4), %vm2728_vm0, %v2727_v1  ;;  %v2729_v8 = vmov (!%p2368_p4), -1e+30   ;;  %vm822_vm3 = vcmask (!%p2368_p4), 64512   ;;  %v2369_v10 = vld [vmem:[%s3193_s3] ss:$0 sm:$0xff] (!%p2368_p4) }
  0x1a   : > { %s729_s20 = scalar_lea.vmem %s3204_s14, %s2855_s29  ;;  %s732_s16 = scalar_lea.vmem %s3205_s15, %s2855_s29  ;;  %v817_v6 = vshrl.u32 (!%p2368_p4), %v816_v5, 7  ;;  %v819_v7 = vand.u32 (!%p2368_p4), 127, %v816_v5  ;;  %vm813_vm6 = vcmask (!%p2368_p4), 261120  }
  0x1b   : > { %s2865_s22 = scalar_lea.vmem %s3224_s4, %s2417_s30  ;;  %s2887_s4 = scalar_lea.vmem %s3200_s10, %s2417_s30 }
  0x1c   : > { %s2870_s24 = scalar_lea.vmem %s3225_s6, %s2417_s30  ;;  %s718_s6 = scalar_lea.vmem %s3201_s11, %s2855_s29  ;;  %vm820_vm2 = vcmp.ge.s32.totalorder (!%p2368_p4), %v817_v6, %v819_v7 }
  0x1d   : > { %3226 = sst [smem:[#allocation5_spill]] %s2870_s24  ;;  %s2420_s24 = sshll.u32 %s2855_s29, 5  ;;  %v821_v9 = vsel (!%p2368_p4), %vm820_vm2, 0.0, %v2729_v8 }
  0x1e   : > { %s2897_s27 = scalar_lea.vmem %s3202_s12, %s2420_s24  ;;  %v2647_v0 = vld [vmem:[%s3227_s25] sm:$0xff] (!%p2368_p4)   ;;  %s3228_s17 = sld [smem:[#allocation6_spill]] (!%p2368_p4)  ;;  %823 = vst.msk [vmem:[#allocation3] sm:$0xff] (!%p2368_p4), %vm822_vm3, %v821_v9 }
  0x1f   : > { %2473 = vmatpush3.bf16.msra.mxu0 %v2647_v0  ;;  %s3229_s23 = sld [smem:[#allocation7_spill]] }
  0x24   : > { %v738_v2 = vld [vmem:[%s3228_s17] sm:$0xff]  ;;  %v739_v3 = vld [vmem:[%s3228_s17 + $0x8] sm:$0xff] }
  0x25   : > { %v740_v4 = vpack.c.bf16 %v739_v3, %v738_v2  ;;  %v809_v19 = vld [vmem:[%s3229_s23] sm:$0xff]  ;;  %v810_v23 = vld [vmem:[%s3229_s23 + $0x8] sm:$0xff] }
  0x27   : > { %2475 = vmatmul.mubr.msk.bf16.vlgmr.msra.gmra.mrb[0].mxu0 %vm756_vm1, %v740_v4 }
  0xfa   : > { %v794_v11 = vpop.f32.mrb[0].mxu0 }
  0xfb   : > { %v795_v12 = vadd.f32 %v2369_v10, %v794_v11  ;;  %v2476_v13 = vpop.f32.mrb[1].mxu0 }
  0xfc   : > { %v797_v14 = vpop.f32.mrb[2].mxu0 }
  0xfd   : > { %vm801_vm4 = vcmp.ge.f32.partialorder %v795_v12, 0.0  ;;  %v803_v15 = vmul.f32 0.01, %v795_v12  ;;  %v798_v16 = vadd.f32 %v2369_v10, %v797_v14  ;;  %v2477_v17 = vpop.f32.mrb[3].mxu0 }
  0xff   : > { %v805_v18 = vsel %vm801_vm4, %v795_v12, %v803_v15  ;;  %vm802_vm5 = vcmp.ge.f32.partialorder %v798_v16, 0.0  ;;  %v804_v20 = vmul.f32 0.01, %v798_v16 }
 0x100   : > { %v807_v21 = vmul.f32 5.656854, %v805_v18 }
 0x101   : > { %v806_v22 = vsel %vm802_vm5, %v798_v16, %v804_v20 }
 0x102   : > { %v811_v24 = vadd.f32 %v809_v19, %v807_v21  ;;  %v808_v25 = vmul.f32 5.656854, %v806_v22 }
 0x104   : > { %814 = vst.msk [vmem:[#allocation2] sm:$0xff] %vm813_vm6, %v811_v24  ;;  %v812_v26 = vadd.f32 %v810_v23, %v808_v25 }
 0x106   : > { %815 = vst.msk [vmem:[#allocation2 + $0x8] sm:$0xff] %vm813_vm6, %v812_v26 }
 0x107 PF: > { %v2663_v27 = vld [vmem:[%s2865_s22] sm:$0xff]   ;;  %v2730_v28 = vmov 0.0   ;;  %v2664_v29 = vld [vmem:[%s2865_s22 + $0x8] sm:$0xff]   ;;  %vm2731_vm7 = vmmov 0   ;;  %vm851_vm8 = vcmask 261120   ;;  %s3230_s18 = scalar_lea.vmem %s3195_s5, %s2855_s29  ;;  %s2732_s1 = smov 96  }
 0x108   : > { %2478 = vmatprep.subr.bf16.mxu0 %v2730_v28  ;;  %2486 = vmatprep.subr.bf16.mxu1 %v2730_v28  ;;  %v2372_v33 = vld [vmem:[%s3230_s18] ss:$0 sm:$0xff]  ;;  %vm901_vm9 = vcmask 64512   ;;  %s2733_s19 = smov 64   ;;  %s2734_s30 = smov 88   ;;  %vm1030_vm10 = vcmask 1043456  }
 0x109   : > { %2479 = vmatpush3.bf16.msra.mxu0 %v2663_v27  ;;  %2482 = vmatprep.mubr.msk.bf16.mxu0 %vm2731_vm7, %v2730_v28  ;;  %s2735_s21 = smov 120   ;;  %s2736_s2 = smov 56   ;;  %vm1820_vm11 = vcmask 130048   ;;  %vm1823_vm12 = vcmask 195584   ;;  %vm2051_vm13 = vcmask 523264  }
 0x10a   : > { %2480 = vmatprep.subr.bf16.mxu0 %v2730_v28  ;;  %2488 = vmatprep.mubr.msk.bf16.mxu1 %vm2731_vm7, %v2730_v28  ;;  %s2737_s25 = smov 80   ;;  %s2738_s24 = smov 112  }
 0x10b   : > { %v2936_v30 = vld [vmem:[#allocation2] sm:$0xff]  ;;  %s2739_s22 = smov 48   ;;  %s2740_s26 = smov 72  }
 0x10c   : > { %s2741_s18 = smov 104   ;;  %p2410_p5 = scmp.ne.s32.totalorder %s2849_s28, 1 }
 0x10d   : > { %v2938_v31 = vld [vmem:[#allocation2 + $0x8] sm:$0xff]  ;;  %2481 = vmatpush3.bf16.msra.mxu0 %v2664_v29  ;;  %v2972_v47 = vld [vmem:[#allocation3] sm:$0xff]  ;;  %vm2747_vm14 = vmmov (!%p2410_p5), 0  }
 0x10e   : > { %v827_v32 = vpack.c.bf16 %v2938_v31, %v2936_v30  ;;  %2492 = vmatprep.subr.bf16.mxu0 %v2730_v28 }
 0x110   : > { %2483 = vmatmul.mubr.msk.bf16.vlgmr.msra.gmra.mrb[0].mxu0 %vm851_vm8, %v827_v32 }
 0x111   : > { %2494 = vmatprep.mubr.msk.bf16.mxu0 %vm2731_vm7, %v2730_v28 }
 0x1e3   : > { %v889_v34 = vpop.f32.mrb[0].mxu0 }
 0x1e4   : > { %v890_v35 = vadd.f32 %v2372_v33, %v889_v34  ;;  %v2484_v36 = vpop.f32.mrb[1].mxu0 }
 0x1e5   : > { %v892_v37 = vpop.f32.mrb[2].mxu0 }
 0x1e6   : > { %v2954_v38 = vpack.c.bf16 %v890_v35, %v890_v35  ;;  %v893_v39 = vadd.f32 %v2372_v33, %v892_v37  ;;  %v2485_v40 = vpop.f32.mrb[3].mxu0 }
 0x1e8   : > { %899 = vrot.lane.b32.xlu0 %v2954_v38, %s2732_s1  ;;  %v2957_v41 = vpack.c.bf16 %v893_v39, %v893_v39 }
 0x1ec   : > { %949 = vrot.lane.b32.xlu0 %v2957_v41, %s2732_s1  ;;  %s2742_s1 = smov 40  }
 0x25a   : > { %v900_v42 = vpop.permute.xlu0 %899 }
 0x25b   : > { %v906_v43 = vsel %vm901_vm9, %v900_v42, 0 }
 0x25c   : > { %2487 = vmatpush3.bf16.xpose.msra.mxu1 %v906_v43 }
 0x25d   : > { %2498 = vmatprep.subr.bf16.mxu1 %v2730_v28 }
 0x25e   : > { %v950_v44 = vpop.permute.xlu0 %949 }
 0x25f   : > { %v955_v45 = vsel %vm901_vm9, %v950_v44, 0 }
 0x260   : > { %2493 = vmatpush3.bf16.xpose.msra.mxu0 %v955_v45 }
 0x261   : > { %2504 = vmatprep.subr.bf16.mxu0 %v2730_v28 }
 0x263   : > { %2489 = vmatmul.mubr.msk.bf16.vlgmr.msra.gmra.mrb[0].mxu1 %vm901_vm9, %v2954_v38 }
 0x264   : > { %2500 = vmatprep.mubr.msk.bf16.mxu1 %vm2731_vm7, %v2730_v28 }
 0x267   : > { %2495 = vmatmul.mubr.msk.bf16.vlgmr.msra.gmra.mrb[4].mxu0 %vm901_vm9, %v2957_v41 }
 0x268   : > { %2506 = vmatprep.mubr.msk.bf16.mxu0 %vm2731_vm7, %v2730_v28 }
 0x336   : > { %v942_v46 = vpop.f32.mrb[0].mxu1 }
 0x337   : > { %v997_v48 = vmul.f32 0.35355338, %v942_v46  ;;  %v2490_v49 = vpop.f32.mrb[1].mxu1 }
 0x338   : > { %v945_v50 = vpop.f32.mrb[2].mxu1 }
 0x339   : > { %v2491_v51 = vpop.f32.mrb[3].mxu1  ;;  %v999_v52 = vadd.f32 %v997_v48, %v2972_v47 }
 0x33a   : > { %v991_v53 = vpop.f32.mrb[4].mxu0 }
 0x33b   : > { %v998_v54 = vmul.f32 0.35355338, %v991_v53  ;;  %v2496_v55 = vpop.f32.mrb[5].mxu0  ;;  %v1001_v56 = vsel %vm901_vm9, %v999_v52, -inf }
 0x33c   : > { %1002 = vmax.xlane.f32.xlu1 %v1001_v56  ;;  %v994_v57 = vpop.f32.mrb[6].mxu0 }
 0x33d   : > { %v2497_v58 = vpop.f32.mrb[7].mxu0  ;;  %v1000_v59 = vadd.f32 %v998_v54, %v2972_v47 }
 0x33f   : > { %v1004_v60 = vsel %vm901_vm9, %v1000_v59, -inf }
 0x340   : > { %1005 = vmax.xlane.f32.xlu1 %v1004_v60 }
 0x351   : > { %1025 = vrot.lane.b32.xlu1 %v2954_v38, %s2733_s19 }
 0x355   : > { %1074 = vrot.lane.b32.xlu1 %v2957_v41, %s2733_s19  ;;  %s2743_s19 = smov 8  }
 0x359   : > { %1124 = vrot.lane.b32.xlu1 %v2954_v38, %s2734_s30 }
 0x3c9   : > { %v1003_v61 = vpop.xlane.xlu1 %1002 }
 0x3ca   : > { %v1007_v62 = vsub.f32 %v999_v52, %v1003_v61 }
 0x3cc   : > { %v1009_v63 = vmul.f32 1.442695, %v1007_v62 }
 0x3cd   : > { %v1006_v0 = vpop.xlane.xlu1 %1005 }
 0x3ce   : > { %2673 = vpow2.f32 %v1009_v63  ;;  %v1008_v1 = vsub.f32 %v1000_v59, %v1006_v0 }
 0x3d0   : > { %v1011_v2 = vmul.f32 1.442695, %v1008_v1 }
 0x3d1   : > { %v1026_v3 = vpop.permute.xlu1 %1025 }
 0x3d2   : > { %2675 = vpow2.f32 %v1011_v2  ;;  %v1032_v4 = vsel %vm1030_vm10, %v1026_v3, 0 }
 0x3d3   : > { %2499 = vmatpush3.bf16.msra.mxu1 %v1032_v4 }
 0x3d4   : > { %2510 = vmatprep.subr.bf16.mxu1 %v2730_v28 }
 0x3d5   : > { %v1075_v5 = vpop.permute.xlu1 %1074 }
 0x3d6   : > { %v1080_v6 = vsel %vm1030_vm10, %v1075_v5, 0 }
 0x3d7   : > { %2505 = vmatpush3.bf16.msra.mxu0 %v1080_v6 }
 0x3d8   : > { %v2674_v7 = vpop.eup %2673  ;;  %2516 = vmatprep.subr.bf16.mxu0 %v2730_v28 }
 0x3d9   : > { %v1013_v8 = vsel %vm901_vm9, %v2674_v7, 0.0  ;;  %v1125_v11 = vpop.permute.xlu1 %1124 }
 0x3da   : > { %1014 = vadd.xlane.f32.xlu0 %v1013_v8  ;;  %v1130_v18 = vsel %vm901_vm9, %v1125_v11, 0 }
 0x3dc   : > { %v2676_v9 = vpop.eup %2675 }
 0x3dd   : > { %v1016_v10 = vsel %vm901_vm9, %v2676_v9, 0.0 }
 0x3de   : > { %1017 = vadd.xlane.f32.xlu1 %v1016_v10 }
 0x3ef   : > { %1174 = vrot.lane.b32.xlu1 %v2957_v41, %s2734_s30  ;;  %s2744_s30 = smov 16  }
 0x3f0   : > { %1122 = vrot.lane.b32.xlu0 %v2954_v38, %s2735_s21 }
 0x3f3   : > { %1172 = vrot.lane.b32.xlu1 %v2957_v41, %s2735_s21  ;;  %s3231_s21 = sld [smem:[#allocation5_spill]] }
 0x467   : > { %v1015_v12 = vpop.xlane.xlu0 %1014 }
 0x468   : > { %2677 = vrcp.f32 %v1015_v12 }
 0x46b   : > { %v1018_v13 = vpop.xlane.xlu1 %1017  ;;  %v1123_v23 = vpop.permute.xlu0 %1122 }
 0x46c   : > { %2679 = vrcp.f32 %v1018_v13 }
 0x46f   : > { %v1175_v20 = vpop.permute.xlu1 %1174 }
 0x470   : > { %v1180_v22 = vsel %vm901_vm9, %v1175_v20, 0 }
 0x472   : > { %v2678_v14 = vpop.eup %2677 }
 0x473   : > { %v1021_v15 = vmul.f32 %v2678_v14, %v2674_v7  ;;  %v1173_v24 = vpop.permute.xlu1 %1172 }
 0x475   : > { %v1023_v16 = vpack.c.bf16 %v1021_v15, %v1021_v15 }
 0x476   : > { %v2680_v17 = vpop.eup %2679 }
 0x477   : > { %v1022_v19 = vmul.f32 %v2680_v17, %v2676_v9  ;;  %2501 = vmatmul.mubr.msk.bf16.vlgmr.msra.gmra.mrb[4].mxu1 %vm901_vm9, %v1023_v16 }
 0x478   : > { %2511 = vmatpush3.bf16.xpose.msra.mxu1 %v1130_v18  ;;  %2512 = vmatprep.mubr.msk.bf16.mxu1 %vm2731_vm7, %v2730_v28 }
 0x479   : > { %v1024_v21 = vpack.c.bf16 %v1022_v19, %v1022_v19  ;;  %2522 = vmatprep.subr.bf16.mxu1 %v2730_v28 }
 0x47b   : > { %2507 = vmatmul.mubr.msk.bf16.vlgmr.msra.gmra.mrb[8].mxu0 %vm901_vm9, %v1024_v21 }
 0x47c   : > { %2517 = vmatpush3.bf16.xpose.msra.mxu0 %v1180_v22  ;;  %2518 = vmatprep.mubr.msk.bf16.mxu0 %vm2731_vm7, %v2730_v28 }
 0x47d   : > { %2528 = vmatprep.subr.bf16.mxu0 %v2730_v28 }
 0x47f   : > { %2513 = vmatmul.mubr.msk.bf16.vlgmr.msra.gmra.mrb[8].mxu1 %vm901_vm9, %v1123_v23 }
 0x480   : > { %2524 = vmatprep.mubr.msk.bf16.mxu1 %vm2731_vm7, %v2730_v28 }
 0x483   : > { %2519 = vmatmul.mubr.msk.bf16.vlgmr.msra.gmra.mrb[12].mxu0 %vm901_vm9, %v1173_v24 }
 0x484   : > { %2530 = vmatprep.mubr.msk.bf16.mxu0 %vm2731_vm7, %v2730_v28 }
 0x54a   : > { %v3006_v25 = vpop.f32.mrb[4].mxu1 }
 0x54b   : > { %v2502_v26 = vpop.f32.mrb[5].mxu1 }
 0x54c   : > { %v1071_v27 = vpop.f32.mrb[6].mxu1 }
 0x54d   : > { %v2503_v29 = vpop.f32.mrb[7].mxu1 }
 0x54e   : > { %v3008_v32 = vpop.f32.mrb[8].mxu0 }
 0x54f   : > { %v2508_v33 = vpop.f32.mrb[9].mxu0 }
 0x550   : > { %v1119_v34 = vpop.f32.mrb[10].mxu0 }
 0x551   : > { %v2509_v35 = vpop.f32.mrb[11].mxu0 }
 0x552   : > { %v1166_v36 = vpop.f32.mrb[8].mxu1 }
 0x553   : > { %v1222_v37 = vmul.f32 0.35355338, %v1166_v36  ;;  %v2514_v39 = vpop.f32.mrb[9].mxu1 }
 0x554   : > { %v1169_v40 = vpop.f32.mrb[10].mxu1 }
 0x555   : > { %v2515_v42 = vpop.f32.mrb[11].mxu1  ;;  %v1224_v43 = vadd.f32 %v1222_v37, %v2972_v47 }
 0x556   : > { %v1216_v44 = vpop.f32.mrb[12].mxu0 }
 0x557   : > { %v1223_v45 = vmul.f32 0.35355338, %v1216_v44  ;;  %v2520_v46 = vpop.f32.mrb[13].mxu0  ;;  %v1226_v48 = vsel %vm901_vm9, %v1224_v43, -inf }
 0x558   : > { %1227 = vmax.xlane.f32.xlu1 %v1226_v48  ;;  %v1219_v49 = vpop.f32.mrb[14].mxu0 }
 0x559   : > { %v2521_v50 = vpop.f32.mrb[15].mxu0  ;;  %v1225_v51 = vadd.f32 %v1223_v45, %v2972_v47 }
 0x55b   : > { %v1229_v52 = vsel %vm901_vm9, %v1225_v51, -inf }
 0x55c   : > { %1230 = vmax.xlane.f32.xlu0 %v1229_v52 }
 0x569   : > { %1250 = vrot.lane.b32.xlu1 %v2954_v38, %s2736_s2 }
 0x56d   : > { %1348 = vrot.lane.b32.xlu1 %v2954_v38, %s2737_s25 }
 0x572   : > { %1298 = vrot.lane.b32.xlu0 %v2957_v41, %s2736_s2  ;;  %s2745_s2 = smov 24  }
 0x576   : > { %1346 = vrot.lane.b32.xlu0 %v2954_v38, %s2738_s24 }
 0x5e5   : > { %v1228_v53 = vpop.xlane.xlu1 %1227 }
 0x5e6   : > { %v1232_v54 = vsub.f32 %v1224_v43, %v1228_v53 }
 0x5e8   : > { %v1234_v55 = vmul.f32 1.442695, %v1232_v54 }
 0x5e9   : > { %v1251_v56 = vpop.permute.xlu1 %1250  ;;  %v1231_v57 = vpop.xlane.xlu0 %1230 }
 0x5ea   : > { %2681 = vpow2.f32 %v1234_v55  ;;  %v1256_v58 = vsel %vm1030_vm10, %v1251_v56, 0  ;;  %v1233_v59 = vsub.f32 %v1225_v51, %v1231_v57 }
 0x5eb   : > { %2523 = vmatpush3.bf16.msra.mxu1 %v1256_v58 }
 0x5ec   : > { %v1236_v60 = vmul.f32 1.442695, %v1233_v59  ;;  %2534 = vmatprep.subr.bf16.mxu1 %v2730_v28 }
 0x5ed   : > { %v1299_v61 = vpop.permute.xlu0 %1298  ;;  %v1349_v3 = vpop.permute.xlu1 %1348 }
 0x5ee   : > { %2683 = vpow2.f32 %v1236_v60  ;;  %v1304_v62 = vsel %vm1030_vm10, %v1299_v61, 0  ;;  %v1354_v10 = vsel %vm901_vm9, %v1349_v3, 0 }
 0x5ef   : > { %2529 = vmatpush3.bf16.msra.mxu0 %v1304_v62 }
 0x5f0   : > { %2540 = vmatprep.subr.bf16.mxu0 %v2730_v28 }
 0x5f1   : > { %v1347_v15 = vpop.permute.xlu0 %1346 }
 0x5f4   : > { %v2682_v63 = vpop.eup %2681 }
 0x5f5   : > { %v1238_v0 = vsel %vm901_vm9, %v2682_v63, 0.0 }
 0x5f6   : > { %1239 = vadd.xlane.f32.xlu1 %v1238_v0 }
 0x5f8   : > { %v2684_v1 = vpop.eup %2683 }
 0x5f9   : > { %v1241_v2 = vsel %vm901_vm9, %v2684_v1, 0.0 }
 0x5fa   : > { %1242 = vadd.xlane.f32.xlu1 %v1241_v2 }
 0x60b   : > { %1398 = vrot.lane.b32.xlu1 %v2957_v41, %s2737_s25 }
 0x60f   : > { %1396 = vrot.lane.b32.xlu1 %v2957_v41, %s2738_s24 }
 0x683   : > { %v1240_v4 = vpop.xlane.xlu1 %1239 }
 0x684   : > { %2685 = vrcp.f32 %v1240_v4 }
 0x687   : > { %v1243_v5 = vpop.xlane.xlu1 %1242 }
 0x688   : > { %2687 = vrcp.f32 %v1243_v5 }
 0x68b   : > { %v1399_v12 = vpop.permute.xlu1 %1398 }
 0x68c   : > { %v1404_v14 = vsel %vm901_vm9, %v1399_v12, 0 }
 0x68e   : > { %v2686_v6 = vpop.eup %2685 }
 0x68f   : > { %v1246_v7 = vmul.f32 %v2686_v6, %v2682_v63  ;;  %v1397_v16 = vpop.permute.xlu1 %1396 }
 0x691   : > { %v1248_v8 = vpack.c.bf16 %v1246_v7, %v1246_v7 }
 0x692   : > { %v2688_v9 = vpop.eup %2687 }
 0x693   : > { %v1247_v11 = vmul.f32 %v2688_v9, %v2684_v1  ;;  %2525 = vmatmul.mubr.msk.bf16.vlgmr.msra.gmra.mrb[12].mxu1 %vm901_vm9, %v1248_v8 }
 0x694   : > { %2535 = vmatpush3.bf16.xpose.msra.mxu1 %v1354_v10  ;;  %2536 = vmatprep.mubr.msk.bf16.mxu1 %vm2731_vm7, %v2730_v28 }
 0x695   : > { %v1249_v13 = vpack.c.bf16 %v1247_v11, %v1247_v11  ;;  %2546 = vmatprep.subr.bf16.mxu1 %v2730_v28 }
 0x697   : > { %2531 = vmatmul.mubr.msk.bf16.vlgmr.msra.gmra.mrb[16].mxu0 %vm901_vm9, %v1249_v13 }
 0x698   : > { %2541 = vmatpush3.bf16.xpose.msra.mxu0 %v1404_v14  ;;  %2542 = vmatprep.mubr.msk.bf16.mxu0 %vm2731_vm7, %v2730_v28 }
 0x699   : > { %2552 = vmatprep.subr.bf16.mxu0 %v2730_v28 }
 0x69b   : > { %2537 = vmatmul.mubr.msk.bf16.vlgmr.msra.gmra.mrb[16].mxu1 %vm901_vm9, %v1347_v15 }
 0x69c   : > { %2548 = vmatprep.mubr.msk.bf16.mxu1 %vm2731_vm7, %v2730_v28 }
 0x69f   : > { %2543 = vmatmul.mubr.msk.bf16.vlgmr.msra.gmra.mrb[20].mxu0 %vm901_vm9, %v1397_v16 }
 0x6a0   : > { %2554 = vmatprep.mubr.msk.bf16.mxu0 %vm2731_vm7, %v2730_v28 }
 0x766   : > { %v3042_v17 = vpop.f32.mrb[12].mxu1 }
 0x767   : > { %v2526_v18 = vpop.f32.mrb[13].mxu1 }
 0x768   : > { %v1295_v19 = vpop.f32.mrb[14].mxu1 }
 0x769   : > { %v2527_v20 = vpop.f32.mrb[15].mxu1 }
 0x76a   : > { %v3044_v21 = vpop.f32.mrb[16].mxu0 }
 0x76b   : > { %v2648_v22 = vpack.i.bf16 %v3044_v21, %v3042_v17  ;;  %v2532_v23 = vpop.f32.mrb[17].mxu0 }
 0x76c   : > { %v1343_v24 = vpop.f32.mrb[18].mxu0 }
 0x76d   : > { %v2533_v26 = vpop.f32.mrb[19].mxu0 }
 0x76e   : > { %v1390_v27 = vpop.f32.mrb[16].mxu1 }
 0x76f   : > { %v1446_v29 = vmul.f32 0.35355338, %v1390_v27  ;;  %v2538_v33 = vpop.f32.mrb[17].mxu1 }
 0x770   : > { %v1393_v34 = vpop.f32.mrb[18].mxu1 }
 0x771   : > { %v2539_v35 = vpop.f32.mrb[19].mxu1  ;;  %v1448_v36 = vadd.f32 %v1446_v29, %v2972_v47 }
 0x772   : > { %v1440_v37 = vpop.f32.mrb[20].mxu0 }
 0x773   : > { %v1447_v39 = vmul.f32 0.35355338, %v1440_v37  ;;  %v2544_v40 = vpop.f32.mrb[21].mxu0  ;;  %v1450_v42 = vsel %vm901_vm9, %v1448_v36, -inf }
 0x774   : > { %1451 = vmax.xlane.f32.xlu0 %v1450_v42  ;;  %v1443_v43 = vpop.f32.mrb[22].mxu0 }
 0x775   : > { %v2545_v44 = vpop.f32.mrb[23].mxu0  ;;  %v1449_v45 = vadd.f32 %v1447_v39, %v2972_v47 }
 0x777   : > { %v1453_v46 = vsel %vm901_vm9, %v1449_v45, -inf }
 0x778   : > { %1454 = vmax.xlane.f32.xlu1 %v1453_v46 }
 0x789   : > { %1474 = vrot.lane.b32.xlu1 %v2954_v38, %s2739_s22 }
 0x78d   : > { %1572 = vrot.lane.b32.xlu1 %v2954_v38, %s2740_s26 }
 0x791   : > { %1622 = vrot.lane.b32.xlu1 %v2957_v41, %s2740_s26  ;;  %s3235_s26 = sld [smem:[#allocation11_spill]] (!%p2410_p5) }
 0x795   : > { %1620 = vrot.lane.b32.xlu1 %v2957_v41, %s2741_s18 }
 0x801   : > { %v1452_v48 = vpop.xlane.xlu0 %1451 }
 0x802   : > { %v1456_v49 = vsub.f32 %v1448_v36, %v1452_v48 }
 0x804   : > { %v1458_v50 = vmul.f32 1.442695, %v1456_v49 }
 0x805   : > { %v1455_v51 = vpop.xlane.xlu1 %1454 }
 0x806   : > { %2689 = vpow2.f32 %v1458_v50  ;;  %v1457_v52 = vsub.f32 %v1449_v45, %v1455_v51 }
 0x808   : > { %v1460_v53 = vmul.f32 1.442695, %v1457_v52 }
 0x809   : > { %v1475_v54 = vpop.permute.xlu1 %1474 }
 0x80a   : > { %2691 = vpow2.f32 %v1460_v53  ;;  %v1480_v55 = vsel %vm1030_vm10, %v1475_v54, 0 }
 0x80b   : > { %2547 = vmatpush3.bf16.msra.mxu1 %v1480_v55 }
 0x80c   : > { %2558 = vmatprep.subr.bf16.mxu1 %v2730_v28 }
 0x80d   : > { %v1573_v1 = vpop.permute.xlu1 %1572 }
 0x80e   : > { %v1578_v5 = vsel %vm901_vm9, %v1573_v1, 0 }
 0x810   : > { %v2690_v56 = vpop.eup %2689 }
 0x811   : > { %v1462_v57 = vsel %vm901_vm9, %v2690_v56, 0.0  ;;  %v1623_v7 = vpop.permute.xlu1 %1622 }
 0x812   : > { %1463 = vadd.xlane.f32.xlu0 %v1462_v57  ;;  %v1628_v9 = vsel %vm901_vm9, %v1623_v7, 0 }
 0x814   : > { %v2692_v58 = vpop.eup %2691 }
 0x815   : > { %v1465_v59 = vsel %vm901_vm9, %v2692_v58, 0.0  ;;  %v1621_v11 = vpop.permute.xlu1 %1620 }
 0x816   : > { %1466 = vadd.xlane.f32.xlu0 %v1465_v59 }
 0x82c   : > { %1522 = vrot.lane.b32.xlu0 %v2957_v41, %s2739_s22  ;;  %s3232_s22 = scalar_lea.vmem %s3197_s7, %s2855_s29 }
 0x830   : > { %1570 = vrot.lane.b32.xlu0 %v2954_v38, %s2741_s18  ;;  %s3233_s18 = scalar_lea.vmem %s3198_s8, %s2855_s29 }
 0x89f   : > { %v1464_v60 = vpop.xlane.xlu0 %1463 }
 0x8a0   : > { %2693 = vrcp.f32 %v1464_v60 }
 0x8a3   : > { %v1467_v61 = vpop.xlane.xlu0 %1466 }
 0x8a4   : > { %2695 = vrcp.f32 %v1467_v61 }
 0x8a7   : > { %v1523_v62 = vpop.permute.xlu0 %1522 }
 0x8a8   : > { %v1528_v63 = vsel %vm1030_vm10, %v1523_v62, 0  ;;  %v2665_v62 = vld [vmem:[%s3231_s21] sm:$0xff]  }
 0x8a9   : > { %2553 = vmatpush3.bf16.msra.mxu0 %v1528_v63  ;;  %v2666_v63 = vld [vmem:[%s3231_s21 + $0x8] sm:$0xff]   ;;  %s3237_s21 = sld [smem:[#allocation13_spill]] (!%p2410_p5) }
 0x8aa   : > { %v2694_v0 = vpop.eup %2693  ;;  %2564 = vmatprep.subr.bf16.mxu0 %v2730_v28 }
 0x8ab   : > { %v1470_v2 = vmul.f32 %v2694_v0, %v2690_v56  ;;  %v1571_v10 = vpop.permute.xlu0 %1570 }
 0x8ad   : > { %v1472_v3 = vpack.c.bf16 %v1470_v2, %v1470_v2 }
 0x8ae   : > { %v2696_v4 = vpop.eup %2695 }
 0x8af   : > { %v1471_v6 = vmul.f32 %v2696_v4, %v2692_v58  ;;  %2549 = vmatmul.mubr.msk.bf16.vlgmr.msra.gmra.mrb[20].mxu1 %vm901_vm9, %v1472_v3 }
 0x8b0   : > { %2559 = vmatpush3.bf16.xpose.msra.mxu1 %v1578_v5  ;;  %2560 = vmatprep.mubr.msk.bf16.mxu1 %vm2731_vm7, %v2730_v28 }
 0x8b1   : > { %v1473_v8 = vpack.c.bf16 %v1471_v6, %v1471_v6  ;;  %2570 = vmatprep.subr.bf16.mxu1 %v2730_v28 }
 0x8b3   : > { %2555 = vmatmul.mubr.msk.bf16.vlgmr.msra.gmra.mrb[24].mxu0 %vm901_vm9, %v1473_v8 }
 0x8b4   : > { %2565 = vmatpush3.bf16.xpose.msra.mxu0 %v1628_v9  ;;  %2566 = vmatprep.mubr.msk.bf16.mxu0 %vm2731_vm7, %v2730_v28 }
 0x8b5   : > { %2576 = vmatprep.subr.bf16.mxu0 %v2730_v28 }
 0x8b7   : > { %2561 = vmatmul.mubr.msk.bf16.vlgmr.msra.gmra.mrb[24].mxu1 %vm901_vm9, %v1571_v10 }
 0x8b8   : > { %2572 = vmatprep.mubr.msk.bf16.mxu1 %vm2731_vm7, %v2730_v28 }
 0x8bb   : > { %2567 = vmatmul.mubr.msk.bf16.vlgmr.msra.gmra.mrb[28].mxu0 %vm901_vm9, %v1621_v11 }
 0x8bc   : > { %2578 = vmatprep.mubr.msk.bf16.mxu0 %vm2731_vm7, %v2730_v28 }
 0x982   : > { %v1516_v12 = vpop.f32.mrb[20].mxu1 }
 0x983   : > { %v2550_v13 = vpop.f32.mrb[21].mxu1 }
 0x984   : > { %v1519_v14 = vpop.f32.mrb[22].mxu1 }
 0x985   : > { %v2551_v15 = vpop.f32.mrb[23].mxu1 }
 0x986   : > { %v1564_v16 = vpop.f32.mrb[24].mxu0 }
 0x987   : > { %v2653_v18 = vpack.i.bf16 %v1564_v16, %v1516_v12  ;;  %v2556_v19 = vpop.f32.mrb[25].mxu0 }
 0x988   : > { %v1567_v20 = vpop.f32.mrb[26].mxu0 }
 0x989   : > { %v2557_v23 = vpop.f32.mrb[27].mxu0 }
 0x98a   : > { %v1614_v24 = vpop.f32.mrb[24].mxu1 }
 0x98b   : > { %v1670_v26 = vmul.f32 0.35355338, %v1614_v24  ;;  %v2562_v27 = vpop.f32.mrb[25].mxu1 }
 0x98c   : > { %v1617_v29 = vpop.f32.mrb[26].mxu1 }
 0x98d   : > { %v2563_v33 = vpop.f32.mrb[27].mxu1  ;;  %v1672_v34 = vadd.f32 %v1670_v26, %v2972_v47 }
 0x98e   : > { %v1664_v35 = vpop.f32.mrb[28].mxu0 }
 0x98f   : > { %v1671_v36 = vmul.f32 0.35355338, %v1664_v35  ;;  %v2568_v37 = vpop.f32.mrb[29].mxu0  ;;  %v1674_v39 = vsel %vm901_vm9, %v1672_v34, -inf }
 0x990   : > { %1675 = vmax.xlane.f32.xlu0 %v1674_v39  ;;  %v1667_v40 = vpop.f32.mrb[30].mxu0 }
 0x991   : > { %v2569_v42 = vpop.f32.mrb[31].mxu0  ;;  %v1673_v43 = vadd.f32 %v1671_v36, %v2972_v47 }
 0x993   : > { %v1677_v44 = vsel %vm901_vm9, %v1673_v43, -inf }
 0x994   : > { %1678 = vmax.xlane.f32.xlu1 %v1677_v44 }
 0x9a5   : > { %1698 = vrot.lane.b32.xlu1 %v2954_v38, %s2742_s1 }
 0x9a9   : > { %2649 = vrot.lane.b32.xlu1 %v2648_v22, %s2743_s19 }
 0x9ad   : > { %2654 = vrot.lane.b32.xlu1 %v2653_v18, %s2744_s30  ;;  %s3234_s30 = scalar_lea.vmem %s3199_s9, %s2855_s29 }
 0xa1d   : > { %v1676_v45 = vpop.xlane.xlu0 %1675 }
 0xa1e   : > { %v1680_v46 = vsub.f32 %v1672_v34, %v1676_v45 }
 0xa20   : > { %v1682_v48 = vmul.f32 1.442695, %v1680_v46 }
 0xa21   : > { %v1679_v49 = vpop.xlane.xlu1 %1678 }
 0xa22   : > { %2697 = vpow2.f32 %v1682_v48  ;;  %v1681_v50 = vsub.f32 %v1673_v43, %v1679_v49 }
 0xa24   : > { %v1684_v47 = vmul.f32 1.442695, %v1681_v50 }
 0xa25   : > { %v1699_v51 = vpop.permute.xlu1 %1698 }
 0xa26   : > { %2699 = vpow2.f32 %v1684_v47  ;;  %v1704_v52 = vsel %vm1030_vm10, %v1699_v51, 0 }
 0xa27   : > { %2571 = vmatpush3.bf16.msra.mxu1 %v1704_v52  ;;  %v2667_v52 = vld [vmem:[%s2887_s4] sm:$0xff]  }
 0xa28   : > { %2582 = vmatprep.subr.bf16.mxu1 %v2730_v28 }
 0xa29   : > { %v2650_v9 = vpop.permute.xlu1 %2649 }
 0xa2a   : > { %v2652_v11 = vunpack.i.h.bf16 %v2650_v9  ;;  %v2651_v12 = vunpack.i.l.bf16 %v2650_v9 }
 0xa2c   : > { %v2698_v38 = vpop.eup %2697  ;;  %v1819_v16 = vsel %vm901_vm9, %v3008_v32, %v2652_v11  ;;  %v1818_v18 = vsel %vm901_vm9, %v3006_v25, %v2651_v12  ;;  %v2392_v32 = vld [vmem:[%s3232_s22] ss:$0 sm:$0xff] }
 0xa2d   : > { %v1686_v17 = vsel %vm901_vm9, %v2698_v38, 0.0  ;;  %v2655_v10 = vpop.permute.xlu1 %2654 }
 0xa2e   : > { %1687 = vadd.xlane.f32.xlu0 %v1686_v17  ;;  %v2657_v13 = vunpack.i.h.bf16 %v2655_v10  ;;  %v2656_v14 = vunpack.i.l.bf16 %v2655_v10  ;;  %v2669_v17 = vld [vmem:[%s2897_s27] sm:$0xff]  }
 0xa30   : > { %v2700_v21 = vpop.eup %2699  ;;  %v1821_v23 = vsel %vm1820_vm11, %v1818_v18, %v2656_v14  ;;  %v1822_v24 = vsel %vm1820_vm11, %v1819_v16, %v2657_v13 }
 0xa31   : > { %v1689_v22 = vsel %vm901_vm9, %v2700_v21, 0.0 }
 0xa32   : > { %1690 = vadd.xlane.f32.xlu0 %v1689_v22 }
 0xa48   : > { %1746 = vrot.lane.b32.xlu0 %v2957_v41, %s2742_s1  ;;  %s3236_s1 = sld [smem:[#allocation12_spill]] (!%p2410_p5) }
 0xabb   : > { %v1688_v53 = vpop.xlane.xlu0 %1687 }
 0xabc   : > { %2701 = vrcp.f32 %v1688_v53 }
 0xabf   : > { %v1691_v54 = vpop.xlane.xlu0 %1690 }
 0xac0   : > { %2703 = vrcp.f32 %v1691_v54 }
 0xac3   : > { %v1747_v55 = vpop.permute.xlu0 %1746 }
 0xac4   : > { %v1752_v56 = vsel %vm1030_vm10, %v1747_v55, 0 }
 0xac5   : > { %2577 = vmatpush3.bf16.msra.mxu0 %v1752_v56 }
 0xac6   : > { %v2702_v57 = vpop.eup %2701  ;;  %2590 = vmatprep.subr.bf16.mxu0 %v2730_v28 }
 0xac7   : > { %v1694_v58 = vmul.f32 %v2702_v57, %v2698_v38  ;;  %v2668_v38 = vld [vmem:[%s2887_s4 + $0x8] sm:$0xff]  }
 0xac9   : > { %v1696_v59 = vpack.c.bf16 %v1694_v58, %v1694_v58 }
 0xaca   : > { %v2704_v60 = vpop.eup %2703 }
 0xacb   : > { %v1695_v61 = vmul.f32 %v2704_v60, %v2700_v21  ;;  %2573 = vmatmul.mubr.msk.bf16.vlgmr.msra.gmra.mrb[28].mxu1 %vm901_vm9, %v1696_v59  ;;  %v2670_v21 = vld [vmem:[%s2897_s27 + $0x8] sm:$0xff]   ;;  %v2396_v59 = vld [vmem:[%s3233_s18] ss:$0 sm:$0xff] }
 0xacc   : > { %2586 = vmatprep.mubr.msk.bf16.mxu1 %vm2731_vm7, %v2730_v28  ;;  %2583 = vmatpush3.bf16.msra.mxu1 %v2665_v62 }
 0xacd   : > { %v1697_v41 = vpack.c.bf16 %v1695_v61, %v1695_v61  ;;  %2584 = vmatprep.subr.bf16.mxu1 %v2730_v28 }
 0xacf   : > { %2579 = vmatmul.mubr.msk.bf16.vlgmr.msra.gmra.mrb[32].mxu0 %vm901_vm9, %v1697_v41 }
 0xad0   : > { %2594 = vmatprep.mubr.msk.bf16.mxu0 %vm2731_vm7, %v2730_v28  ;;  %2585 = vmatpush3.bf16.msra.mxu1 %v2666_v63  ;;  %v2397_v63 = vld [vmem:[%s3234_s30] ss:$0 sm:$0xff] }
 0xad1   : > { %2598 = vmatprep.subr.bf16.mxu1 %v2730_v28  ;;  %2591 = vmatpush3.bf16.msra.mxu0 %v2667_v52  ;;  %v2409_v52 = vld [vmem:[%s732_s16] ss:$0 sm:$0xff] }
 0xad2   : > { %2592 = vmatprep.subr.bf16.mxu0 %v2730_v28 }
 0xad5   : > { %2593 = vmatpush3.bf16.msra.mxu0 %v2668_v38 }
 0xb9e   : > { %v1740_v0 = vpop.f32.mrb[28].mxu1 }
 0xb9f   : > { %v2574_v1 = vpop.f32.mrb[29].mxu1 }
 0xba0   : > { %v1743_v2 = vpop.f32.mrb[30].mxu1 }
 0xba1   : > { %v2575_v3 = vpop.f32.mrb[31].mxu1 }
 0xba2   : > { %v1788_v4 = vpop.f32.mrb[32].mxu0 }
 0xba3   : > { %v2658_v5 = vpack.i.bf16 %v1788_v4, %v1740_v0  ;;  %v2580_v6 = vpop.f32.mrb[33].mxu0  ;;  %v2671_v4 = vld [vmem:[%s2897_s27 + $0x10] sm:$0xff]  }
 0xba4   : > { %v1791_v7 = vpop.f32.mrb[34].mxu0  ;;  %v2398_v6 = vld [vmem:[%s718_s6] ss:$0 sm:$0xff] }
 0xba5   : > { %2659 = vrot.lane.b32.xlu0 %v2658_v5, %s2745_s2  ;;  %v2581_v8 = vpop.f32.mrb[35].mxu0  ;;  %v2672_v5 = vld [vmem:[%s2897_s27 + $0x18] sm:$0xff]  }
 0xc17   : > { %v2660_v15 = vpop.permute.xlu0 %2659 }
 0xc18   : > { %v2662_v19 = vunpack.i.h.bf16 %v2660_v15  ;;  %v2661_v20 = vunpack.i.l.bf16 %v2660_v15 }
 0xc1a   : > { %v1825_v26 = vsel %vm1823_vm12, %v1822_v24, %v2662_v19  ;;  %v1824_v27 = vsel %vm1823_vm12, %v1821_v23, %v2661_v20 }
 0xc1b   : > { %v1826_v29 = vpack.c.bf16 %v1825_v26, %v1824_v27 }
 0xc1d   : > { %2587 = vmatmul.mubr.msk.bf16.vlgmr.msra.gmra.mrb[32].mxu1 %vm851_vm8, %v1826_v29 }
 0xc1e   : > { %2606 = vmatprep.mubr.msk.bf16.mxu1 %vm2731_vm7, %v2730_v28  ;;  %2599 = vmatpush3.bf16.msra.mxu1 %v2669_v17 }
 0xc1f   : > { %2600 = vmatprep.subr.bf16.mxu1 %v2730_v28 }
 0xc22   : > { %2601 = vmatpush3.bf16.msra.mxu1 %v2670_v21 }
 0xc23   : > { %2602 = vmatprep.subr.bf16.mxu1 %v2730_v28 }
 0xc26   : > { %2603 = vmatpush3.bf16.msra.mxu1 %v2671_v4 }
 0xc27   : > { %2604 = vmatprep.subr.bf16.mxu1 %v2730_v28  ;;  %v2402_v28 = vld [vmem:[%s726_s0] ss:$0 sm:$0xff] }
 0xc2a   : > { %2605 = vmatpush3.bf16.msra.mxu1 %v2672_v5 }
 0xcf0   : > { %v1887_v33 = vpop.f32.mrb[32].mxu1 }
 0xcf1   : > { %v1888_v34 = vadd.f32 %v2392_v32, %v1887_v33  ;;  %v2588_v25 = vpop.f32.mrb[33].mxu1 }
 0xcf2   : > { %v1890_v35 = vpop.f32.mrb[34].mxu1 }
 0xcf3   : > { %v1891_v36 = vadd.f32 %v2392_v32, %v1890_v35  ;;  %v2589_v37 = vpop.f32.mrb[35].mxu1  ;;  %v1894_v39 = vadd.f32 %v1888_v34, %v2936_v30 }
 0xcf5   : > { %v1898_v40 = vsel %vm851_vm8, %v1894_v39, 0.0  ;;  %v1895_v42 = vadd.f32 %v1891_v36, %v2938_v31 }
 0xcf6   : > { %1899 = vadd.xlane.f32.xlu1 %v1898_v40 }
 0xcf7   : > { %v1901_v43 = vsel %vm851_vm8, %v1895_v42, 0.0 }
 0xcf8   : > { %1902 = vadd.xlane.f32.xlu0 %v1901_v43 }
 0xd83   : > { %v1900_v44 = vpop.xlane.xlu1 %1899 }
 0xd84   : > { %v1905_v45 = vmul.f32 0.03125, %v1900_v44 }
 0xd85   : > { %v1903_v46 = vpop.xlane.xlu0 %1902 }
 0xd86   : > { %v1907_v48 = vsub.f32 %v1894_v39, %v1905_v45  ;;  %v1906_v49 = vmul.f32 0.03125, %v1903_v46 }
 0xd88   : > { %v1908_v50 = vsub.f32 %v1895_v42, %v1906_v49  ;;  %v1909_v47 = vmul.f32 %v1907_v48, %v1907_v48 }
 0xd8a   : > { %v1911_v30 = vsel %vm851_vm8, %v1909_v47, 0.0  ;;  %v1910_v51 = vmul.f32 %v1908_v50, %v1908_v50 }
 0xd8b   : > { %1912 = vadd.xlane.f32.xlu0 %v1911_v30  ;;  %v2408_v30 = vld [vmem:[%s729_s20] ss:$0 sm:$0xff] }
 0xd8c   : > { %v1914_v31 = vsel %vm851_vm8, %v1910_v51, 0.0 }
 0xd8d   : > { %1915 = vadd.xlane.f32.xlu1 %v1914_v31 }
 0xe18   : > { %v1913_v22 = vpop.xlane.xlu0 %1912 }
 0xe19   : > { %v1917_v53 = vmul.f32 0.03125, %v1913_v22 }
 0xe1a   : > { %v1916_v54 = vpop.xlane.xlu1 %1915 }
 0xe1b   : > { %v1919_v55 = vadd.f32 1e-05, %v1917_v53  ;;  %v1918_v56 = vmul.f32 0.03125, %v1916_v54  ;;  %v2713_v54 = vld [vmem:[%s3235_s26] sm:$0xff] (!%p2410_p5)  }
 0xe1d   : > { %2705 = vrsqrt.f32 %v1919_v55  ;;  %v1920_v57 = vadd.f32 1e-05, %v1918_v56  ;;  %v2746_v55 = vmov (!%p2410_p5), 0.0   ;;  %v2714_v56 = vld [vmem:[%s3235_s26 + $0x8] sm:$0xff] (!%p2410_p5)  }
 0xe1e   : > { %2610 = vmatprep.subr.bf16.mxu0 (!%p2410_p5), %v2746_v55 }
 0xe1f   : > { %2707 = vrsqrt.f32 %v1920_v57 }
 0xe27   : > { %v2706_v58 = vpop.eup %2705 }
 0xe28   : > { %v1923_v60 = vmul.f32 %v2706_v58, %v1907_v48  ;;  %v2411_v58 = vld [vmem:[%s3236_s1] ss:$0 sm:$0xff] (!%p2410_p5) }
 0xe29   : > { %v2708_v61 = vpop.eup %2707 }
 0xe2a   : > { %v1931_v41 = vmul.f32 %v2396_v59, %v1923_v60  ;;  %v1924_v62 = vmul.f32 %v2708_v61, %v1908_v50 }
 0xe2c   : > { %v1932_v0 = vmul.f32 %v2396_v59, %v1924_v62  ;;  %v1939_v1 = vadd.f32 %v2397_v63, %v1931_v41 }
 0xe2e   : > { %v1940_v2 = vadd.f32 %v2397_v63, %v1932_v0 }
 0xe30   : > { %v1941_v3 = vpack.c.bf16 %v1940_v2, %v1939_v1 }
 0xe32   : > { %2595 = vmatmul.mubr.msk.bf16.vlgmr.msra.gmra.mrb[36].mxu0 %vm851_vm8, %v1941_v3 }
 0xe33   : > { %2611 = vmatpush3.bf16.msra.mxu0 (!%p2410_p5), %v2713_v54  ;;  %2614 = vmatprep.mubr.msk.bf16.mxu0 (!%p2410_p5), %vm2747_vm14, %v2746_v55 }
 0xe34   : > { %2612 = vmatprep.subr.bf16.mxu0 (!%p2410_p5), %v2746_v55 }
 0xe37   : > { %2613 = vmatpush3.bf16.msra.mxu0 (!%p2410_p5), %v2714_v56 }
 0xf05   : > { %v2002_v7 = vpop.f32.mrb[36].mxu0 }
 0xf06   : > { %v2003_v8 = vadd.f32 %v2398_v6, %v2002_v7  ;;  %v2596_v9 = vpop.f32.mrb[37].mxu0 }
 0xf07   : > { %v2005_v10 = vpop.f32.mrb[38].mxu0 }
 0xf08   : > { %v2006_v11 = vadd.f32 %v2398_v6, %v2005_v10  ;;  %v2597_v12 = vpop.f32.mrb[39].mxu0  ;;  %v2009_v13 = vmax.f32 %v2003_v8, 0.0 }
 0xf0a   : > { %v2010_v14 = vmax.f32 %v2006_v11, 0.0 }
 0xf0c   : > { %v2011_v15 = vpack.c.bf16 %v2010_v14, %v2009_v13 }
 0xf0e   : > { %2607 = vmatmul.mubr.msk.bf16.vlgmr.msra.gmra.mrb[36].mxu1 %vm2051_vm13, %v2011_v15 }
 0xfe1   : > { %v2089_v16 = vpop.f32.mrb[36].mxu1 }
 0xfe2   : > { %v2090_v18 = vadd.f32 %v2402_v28, %v2089_v16  ;;  %v2608_v19 = vpop.f32.mrb[37].mxu1 }
 0xfe3   : > { %v2092_v20 = vpop.f32.mrb[38].mxu1 }
 0xfe4   : > { %v2093_v23 = vadd.f32 %v2402_v28, %v2092_v20  ;;  %v2609_v24 = vpop.f32.mrb[39].mxu1  ;;  %v2096_v26 = vadd.f32 %v2090_v18, %v1939_v1 }
 0xfe6   : > { %v2100_v27 = vsel %vm851_vm8, %v2096_v26, 0.0  ;;  %v2097_v29 = vadd.f32 %v2093_v23, %v1940_v2 }
 0xfe7   : > { %2101 = vadd.xlane.f32.xlu0 %v2100_v27 }
 0xfe8   : > { %v2103_v32 = vsel %vm851_vm8, %v2097_v29, 0.0 }
 0xfe9   : > { %2104 = vadd.xlane.f32.xlu1 %v2103_v32 }
0x1074   : > { %v2102_v33 = vpop.xlane.xlu0 %2101 }
0x1075   : > { %v2106_v34 = vmul.f32 0.03125, %v2102_v33 }
0x1076   : > { %v2105_v25 = vpop.xlane.xlu1 %2104 }
0x1077   : > { %v2108_v35 = vsub.f32 %v2096_v26, %v2106_v34  ;;  %v2107_v36 = vmul.f32 0.03125, %v2105_v25 }
0x1079   : > { %v2109_v37 = vsub.f32 %v2097_v29, %v2107_v36  ;;  %v2110_v39 = vmul.f32 %v2108_v35, %v2108_v35 }
0x107b   : > { %v2112_v40 = vsel %vm851_vm8, %v2110_v39, 0.0  ;;  %v2111_v42 = vmul.f32 %v2109_v37, %v2109_v37 }
0x107c   : > { %2113 = vadd.xlane.f32.xlu0 %v2112_v40 }
0x107d   : > { %v2115_v43 = vsel %vm851_vm8, %v2111_v42, 0.0 }
0x107e   : > { %2116 = vadd.xlane.f32.xlu1 %v2115_v43 }
0x1109   : > { %v2114_v44 = vpop.xlane.xlu0 %2113 }
0x110a   : > { %v2118_v45 = vmul.f32 0.03125, %v2114_v44 }
0x110b   : > { %v2117_v46 = vpop.xlane.xlu1 %2116 }
0x110c   : > { %v2120_v48 = vadd.f32 1e-05, %v2118_v45  ;;  %v2119_v49 = vmul.f32 0.03125, %v2117_v46 }
0x110e   : > { %2709 = vrsqrt.f32 %v2120_v48  ;;  %v2121_v50 = vadd.f32 1e-05, %v2119_v49 }
0x1110   : > { %2711 = vrsqrt.f32 %v2121_v50 }
0x1118   : > { %v2710_v47 = vpop.eup %2709 }
0x1119   : > { %v2124_v51 = vmul.f32 %v2710_v47, %v2108_v35 }
0x111a   : > { %v2712_v31 = vpop.eup %2711 }
0x111b   : > { %v2132_v38 = vmul.f32 %v2408_v30, %v2124_v51  ;;  %v2125_v17 = vmul.f32 %v2712_v31, %v2109_v37  ;;  %2147 = sbr.rel (%p2410_p5) target bundleno = 4615 (0x1207), region = 100 }
0x111d   : > { %v2140_v21 = vadd.f32 %v2409_v52, %v2132_v38  ;;  %v2133_v22 = vmul.f32 %v2408_v30, %v2125_v17 }
0x111f   : > { %2142 = vst.msk [vmem:[#allocation2] sm:$0xff] %vm851_vm8, %v2140_v21  ;;  %v2141_v53 = vadd.f32 %v2409_v52, %v2133_v22 }
0x1121   : > { %2143 = vst.msk [vmem:[#allocation2 + $0x8] sm:$0xff] %vm851_vm8, %v2141_v53  ;;  %v2148_v57 = vpack.c.bf16 (!%p2410_p5), %v2141_v53, %v2140_v21 }
0x1123   : > { %2615 = vmatmul.mubr.msk.bf16.vlgmr.msra.gmra.mrb[0].mxu0 %vm851_vm8, %v2148_v57 }
0x11f6   : > { %v2209_v59 = vpop.f32.mrb[0].mxu0 }
0x11f7   : > { %v2210_v60 = vadd.f32 %v2411_v58, %v2209_v59  ;;  %v2616_v61 = vpop.f32.mrb[1].mxu0 }
0x11f8   : > { %v2212_v41 = vpop.f32.mrb[2].mxu0 }
0x11f9   : > { %2715 = vtanh.f32 %v2210_v60  ;;  %v2213_v62 = vadd.f32 %v2411_v58, %v2212_v41  ;;  %v2617_v63 = vpop.f32.mrb[3].mxu0 }
0x11fb   : > { %2717 = vtanh.f32 %v2213_v62 }
0x1203   : > { %v2716_v0 = vpop.eup %2715 }
0x1204   : > { %2218 = vst [vmem:[%s3237_s21] sm:$0xff] %v2716_v0 }
0x1205   : > { %v2718_v1 = vpop.eup %2717 }
0x1206   : > { %2219 = vst [vmem:[%s3237_s21 + $0x8] sm:$0xff] %v2718_v1 }
0x1207 PF: > { %s3238_s24 = sld [smem:[#allocation4_spill]] }
0x120d   : > { %s28_s27 = sadd.s32 1, %s3238_s24  }
0x120e   : > { %p25_p6 = scmp.ge.s32.totalorder %s28_s27, 4  }
0x1210   :  { %27 = sbr.rel (!%p25_p6) target bundleno = 9 (0x9), region = 159 }

</bundles_post_ra>
